<compile_context>
chip_gen: v6e
topology: v6e:2x2x1
jax: 0.10.0
libtpu: 0.0.40
codegen_flags: <defaults>
</compile_context>

<pallas_src>
import functools

import jax
import jax.numpy as jnp
from jax.experimental import pallas as pl
from jax.experimental.pallas import tpu as pltpu


def _sigmoid_mul_kernel(gate_ref, x_ref, o_ref):
    # gate_ref: (tile_c, 1)   per-channel gate tile (native dtype)
    # x_ref:    (tile_c, HW)  feature tile (native dtype)
    # o_ref:    (tile_c, HW)
    g = gate_ref[...].astype(jnp.float32)
    gate = 1.0 / (1.0 + jnp.exp(-g))          # exact sigmoid; exp is on the (idle) EUP
    if o_ref.dtype == x_ref.dtype:
        # Multiply in the activation dtype (skips an f32 round trip for bf16).
        o_ref[...] = gate.astype(o_ref.dtype) * x_ref[...]
    else:
        o_ref[...] = (gate * x_ref[...].astype(jnp.float32)).astype(o_ref.dtype)


def _round_up(x, m):
    return ((x + m - 1) // m) * m


def _default_target_steps():
    """4 steps on v7x (2 TCs -> 2 pipelined steps/core), 2 on single-TC chips."""
    try:
        kind = jax.devices()[0].device_kind.lower()
    except Exception:
        kind = ""
    return 4 if "v7" in kind else 2


def _choose_tile_c(c, target_steps):
    """Largest-reasonable tile_c (multiple of 8) giving ~target_steps grid steps."""
    if c <= 8 or target_steps <= 1:
        return c
    tile_c = _round_up(-(-c // target_steps), 8)   # cdiv, rounded up to sublane tile
    if tile_c >= c:
        return c
    return tile_c


def sigmoid_mul(x442, x438, *, tile_c=None, donate_features=False):
    """Computes sigmoid(x442) * x438 for NCHW inputs via a Pallas TPU kernel.

    `donate_features=True` aliases the feature-map buffer as the output; only
    do this when the caller actually donates x438 (e.g. jit donate_argnums)
    and x438 is dead afterwards, otherwise XLA inserts a silent copy.
    """
    assert x442.ndim == 4 and x438.ndim == 4
    n, c, h, w = x438.shape
    assert x442.shape == (n, c, 1, 1)
    assert n == 1, "kernel written for batch=1 (as in the reference module)"

    hw = h * w
    out_dtype = jnp.promote_types(x442.dtype, x438.dtype)

    gate2d = x442.reshape(c, 1)          # native dtype; upcast in-kernel
    x2d = x438.reshape(c, hw)            # native dtype (no extra XLA pass)

    if tile_c is None:
        tile_c = _choose_tile_c(c, _default_target_steps())
    assert tile_c == c or tile_c % 8 == 0, (
        "tile_c must be a multiple of 8 (sublane tiling) unless it equals C")

    grid = (pl.cdiv(c, tile_c),)         # partial last block handled by Pallas

    # Optionally reuse the feature-map buffer for the output (only valid when
    # x438 is truly donated/dead after this op and dtypes match).
    aliases = {1: 0} if (donate_features and out_dtype == x2d.dtype) else {}

    cost = pl.CostEstimate(
        flops=2 * c * hw,
        transcendentals=c,
        bytes_accessed=(c * hw * x2d.dtype.itemsize
                        + c * gate2d.dtype.itemsize
                        + c * hw * jnp.dtype(out_dtype).itemsize),
    )

    out2d = pl.pallas_call(
        _sigmoid_mul_kernel,
        out_shape=jax.ShapeDtypeStruct((c, hw), out_dtype),
        grid_spec=pltpu.PrefetchScalarGridSpec(
            num_scalar_prefetch=0,
            grid=grid,
            in_specs=[
                pl.BlockSpec((tile_c, 1), lambda i: (i, 0)),    # gate tile
                pl.BlockSpec((tile_c, hw), lambda i: (i, 0)),   # feature tile
            ],
            out_specs=pl.BlockSpec((tile_c, hw), lambda i: (i, 0)),
        ),
        compiler_params=pltpu.CompilerParams(
            dimension_semantics=("parallel",),
        ),
        input_output_aliases=aliases,
        cost_estimate=cost,
    )(gate2d, x2d)

    return out2d.reshape(n, c, h, w)


if __name__ == "__main__":
    key = jax.random.PRNGKey(0)
    k1, k2 = jax.random.split(key)

    # Shapes from the module's forward (EfficientNet-B6 SE block).
    C, H, W = 1200, 14, 14
    x438 = jax.random.normal(k1, (1, C, H, W), dtype=jnp.float32)
    x442 = jax.random.normal(k2, (1, C, 1, 1), dtype=jnp.float32)

    out = jax.block_until_ready(sigmoid_mul(x442, x438))
    ref = jax.nn.sigmoid(x442) * x438
    assert out.shape == ref.shape
    assert out.dtype == ref.dtype
    assert jnp.allclose(out, ref, atol=1e-5, rtol=1e-5)

    # Also exercise the non-divisible path (cdiv grid with a partial last block,
    # still >= 2 pipelined steps, never grid=1).
    c2, h2, w2 = 40, 7, 7
    xb = jax.random.normal(k1, (1, c2, h2, w2), dtype=jnp.float32)
    gb = jax.random.normal(k2, (1, c2, 1, 1), dtype=jnp.float32)
    out2 = jax.block_until_ready(sigmoid_mul(gb, xb))
    ref2 = jax.nn.sigmoid(gb) * xb
    assert jnp.allclose(out2, ref2, atol=1e-5, rtol=1e-5)

    print("KERNEL_OK")
</pallas_src>

<mosaic_0001>
module attributes {stable_mosaic.version = 11 : i64} {
  func.func @_sigmoid_mul_kernel(%arg0: i32, %arg1: memref<600x1xf32, #tpu.memory_space<vmem>>, %arg2: memref<600x196xf32, #tpu.memory_space<vmem>>, %arg3: memref<600x196xf32, #tpu.memory_space<vmem>>) attributes {dimension_semantics = [#tpu.dimension_semantics<parallel>], iteration_bounds = array<i64: 2>, scalar_prefetch = 0 : i64, scratch_operands = 0 : i64, tpu.core_type = #tpu.core_type<tc>, window_params = [{transform_indices = @transform_0, window_bounds = array<i64: 600, 1>}, {transform_indices = @transform_1, window_bounds = array<i64: 600, 196>}, {transform_indices = @transform_2, window_bounds = array<i64: 600, 196>}]} {
    %c0 = arith.constant 0 : index
    %c0_0 = arith.constant 0 : index
    %0 = vector.load %arg1[%c0, %c0_0] : memref<600x1xf32, #tpu.memory_space<vmem>>, vector<600x1xf32>
    %cst = arith.constant 0.000000e+00 : f32
    %1 = vector.broadcast %cst : f32 to vector<600x1xf32>
    %2 = arith.subf %1, %0 : vector<600x1xf32>
    %3 = math.exp %2 : vector<600x1xf32>
    %cst_1 = arith.constant 1.000000e+00 : f32
    %4 = vector.broadcast %cst_1 : f32 to vector<600x1xf32>
    %5 = arith.addf %4, %3 : vector<600x1xf32>
    %cst_2 = arith.constant 1.000000e+00 : f32
    %6 = vector.broadcast %cst_2 : f32 to vector<600x1xf32>
    %7 = arith.divf %6, %5 : vector<600x1xf32>
    %c0_3 = arith.constant 0 : index
    %c0_4 = arith.constant 0 : index
    %8 = vector.load %arg2[%c0_3, %c0_4] : memref<600x196xf32, #tpu.memory_space<vmem>>, vector<600x196xf32>
    %9 = vector.broadcast %7 : vector<600x1xf32> to vector<600x196xf32>
    %10 = arith.mulf %9, %8 : vector<600x196xf32>
    %c0_5 = arith.constant 0 : index
    %c0_6 = arith.constant 0 : index
    %11 = vector.load %arg3[%c0_5, %c0_6] : memref<600x196xf32, #tpu.memory_space<vmem>>, vector<600x196xf32>
    tpu.vector_store %arg3[%c0_5, %c0_6], %10 {strides = array<i32>} : memref<600x196xf32, #tpu.memory_space<vmem>>, vector<600x196xf32>,
    return
  }
  func.func @transform_0(%arg0: i32) -> (i32, i32) {
    %c0_i32 = arith.constant 0 : i32
    %c0_i32_0 = arith.constant 0 : i32
    return %arg0, %c0_i32 : i32, i32
  }
  func.func @transform_1(%arg0: i32) -> (i32, i32) {
    %c0_i32 = arith.constant 0 : i32
    %c0_i32_0 = arith.constant 0 : i32
    return %arg0, %c0_i32 : i32, i32
  }
  func.func @transform_2(%arg0: i32) -> (i32, i32) {
    %c0_i32 = arith.constant 0 : i32
    %c0_i32_0 = arith.constant 0 : i32
    return %arg0, %c0_i32 : i32, i32
  }
}

</mosaic_0001>

<bundles_post_ra>
// kernel: tpu_custom_call.1
= control target key start
LH: loop header
LB: loop body
LE: loop exit
PB: predicated region body
PF: predicated region fallthrough
CT: control target
= control target key end

     0   :  { %s1944_s9 = smov 0   ;;  %s2424_s0 = inlined_call_operand.vmem [shape: f32[1200,1], index: 0, kind: input, shape index: {}]   ;;  %s2425_s1 = inlined_call_operand.vmem [shape: f32[1200,196], index: 1, kind: input, shape index: {}]   ;;  %s2426_s2 = inlined_call_operand.vmem [shape: f32[1200,196], index: 2, kind: output, shape index: {}]  }
   0x1 LB: > { %s1595_s10 = sadd.s32 4294967295, %s1926_s9   ;;  %p1599_p0 = scmp.ge.s32.totalorder %s1926_s9, 1  ;;  %s1926_s9 = sphi %s1944_s9, %s12_s9  }
   0x2   : > { %p125_p1 = scmp.lt.s32.totalorder %s1926_s9, 3 }
   0x4   : > { %p126_p2 = pnand %p1599_p0, %p125_p1 }
   0x5   : > { %s154_s11 = smul.u32 (!%p126_p2), 75, %s1595_s10 }
   0x6   : > { %129 = sbr.rel (%p126_p2) target bundleno = 325 (0x145), region = 28 }
   0x7   : > { %p155_p3 = scmp.lt.s32.totalorder (!%p126_p2), %s154_s11, 149 }
   0xb   : > { %v1928_v0 = vmov 0   ;;  %s2428_s11 = smov (!%p155_p3, %s154_s11), 149  ;;  %vm1375_vm0 = vcmask 556032  }
   0xc   : > { %1619 = vset.pattern.permute.xlu1 %v1928_v0  ;;  %1618 = vset.pattern.permute.xlu0 %v1928_v0  ;;  %s1600_s12 = sshll.u32 %s2428_s11, 3  ;;  %s1607_s16 = sshll.u32 %s2428_s11, 4 }
   0xd   : > { %s1958_s15 = scalar_lea.vmem %s2424_s0, %s1600_s12  ;;  %s2039_s19 = scalar_lea.vmem %s2425_s1, %s1607_s16 }
   0xe   : > { %v176_v1 = vld [vmem:[%s1958_s15 + $0x10] sm:$0xff]  ;;  %v174_v2 = vld [vmem:[%s1958_s15] sm:$0xff]  ;;  %v177_v3 = vld [vmem:[%s1958_s15 + $0x18] sm:$0xff]  ;;  %s2048_s22 = scalar_lea.vmem %s2426_s2, %s1607_s16 }
   0xf   : > { %v251_v4 = vsub.f32 0.0, %v176_v1  ;;  %v249_v5 = vsub.f32 0.0, %v174_v2  ;;  %v252_v6 = vsub.f32 0.0, %v177_v3  ;;  %v175_v7 = vld [vmem:[%s1958_s15 + $0x8] sm:$0xff]  ;;  %v178_v9 = vld [vmem:[%s1958_s15 + $0x20] sm:$0xff]  ;;  %v181_v13 = vld [vmem:[%s1958_s15 + $0x38] sm:$0xff] }
  0x10   : > { %v179_v8 = vld [vmem:[%s1958_s15 + $0x28] sm:$0xff]  ;;  %v250_v10 = vsub.f32 0.0, %v175_v7  ;;  %v253_v12 = vsub.f32 0.0, %v178_v9  ;;  %v180_v14 = vld [vmem:[%s1958_s15 + $0x30] sm:$0xff]  ;;  %v256_v21 = vsub.f32 0.0, %v181_v13  ;;  %v182_v24 = vld [vmem:[%s1958_s15 + $0x40] sm:$0xff] }
  0x11   : > { %v254_v11 = vsub.f32 0.0, %v179_v8  ;;  %v183_v15 = vld [vmem:[%s1958_s15 + $0x48] sm:$0xff]  ;;  %v328_v16 = vmul.f32 1.442695, %v251_v4  ;;  %v324_v17 = vmul.f32 1.442695, %v249_v5 }
  0x12   : > { %v330_v18 = vmul.f32 1.442695, %v252_v6  ;;  %v326_v19 = vmul.f32 1.442695, %v250_v10  ;;  %v255_v22 = vsub.f32 0.0, %v180_v14  ;;  %v258_v23 = vsub.f32 0.0, %v183_v15 }
  0x13   : > { %v334_v20 = vmul.f32 1.442695, %v254_v11  ;;  %1620 = vpow2.f32 %v328_v16  ;;  %v185_v25 = vld [vmem:[%s1958_s15 + $0x58] sm:$0xff]  ;;  %v184_v26 = vld [vmem:[%s1958_s15 + $0x50] sm:$0xff]  ;;  %v332_v27 = vmul.f32 1.442695, %v253_v12 }
  0x14   : > { %1622 = vpow2.f32 %v324_v17  ;;  %v257_v28 = vsub.f32 0.0, %v182_v24  ;;  %v187_v29 = vld [vmem:[%s1958_s15 + $0x68] sm:$0xff]  ;;  %v338_v30 = vmul.f32 1.442695, %v256_v21  ;;  %v260_v31 = vsub.f32 0.0, %v185_v25  ;;  %v186_v32 = vld [vmem:[%s1958_s15 + $0x60] sm:$0xff] }
  0x15   : > { %1624 = vpow2.f32 %v330_v18  ;;  %v336_v33 = vmul.f32 1.442695, %v255_v22  ;;  %v259_v34 = vsub.f32 0.0, %v184_v26  ;;  %v189_v35 = vld [vmem:[%s1958_s15 + $0x78] sm:$0xff]  ;;  %v342_v36 = vmul.f32 1.442695, %v258_v23 }
  0x16   : > { %1626 = vpow2.f32 %v326_v19  ;;  %v262_v37 = vsub.f32 0.0, %v187_v29  ;;  %v188_v38 = vld [vmem:[%s1958_s15 + $0x70] sm:$0xff]  ;;  %v340_v39 = vmul.f32 1.442695, %v257_v28  ;;  %v261_v40 = vsub.f32 0.0, %v186_v32  ;;  %v191_v2 = vld [vmem:[%s1958_s15 + $0x88] sm:$0xff] }
  0x17   : > { %1628 = vpow2.f32 %v334_v20  ;;  %v346_v41 = vmul.f32 1.442695, %v260_v31  ;;  %v264_v42 = vsub.f32 0.0, %v189_v35  ;;  %v344_v43 = vmul.f32 1.442695, %v259_v34  ;;  %v190_v5 = vld [vmem:[%s1958_s15 + $0x80] sm:$0xff] }
  0x18   : > { %1630 = vpow2.f32 %v332_v27  ;;  %v263_v44 = vsub.f32 0.0, %v188_v38  ;;  %v350_v45 = vmul.f32 1.442695, %v262_v37  ;;  %v348_v46 = vmul.f32 1.442695, %v261_v40  ;;  %v193_v8 = vld [vmem:[%s1958_s15 + $0x98] sm:$0xff] }
  0x19   : > { %1632 = vpow2.f32 %v338_v30  ;;  %v354_v47 = vmul.f32 1.442695, %v264_v42  ;;  %v266_v11 = vsub.f32 0.0, %v191_v2  ;;  %v192_v12 = vld [vmem:[%s1958_s15 + $0x90] sm:$0xff]  ;;  %v265_v15 = vsub.f32 0.0, %v190_v5  ;;  %v195_v16 = vld [vmem:[%s1958_s15 + $0xa8] sm:$0xff] }
  0x1a   : > { %1634 = vpow2.f32 %v336_v33  ;;  %v352_v48 = vmul.f32 1.442695, %v263_v44  ;;  %v268_v19 = vsub.f32 0.0, %v193_v8  ;;  %v194_v20 = vld [vmem:[%s1958_s15 + $0xa0] sm:$0xff]  ;;  %v267_v23 = vsub.f32 0.0, %v192_v12  ;;  %v197_v24 = vld [vmem:[%s1958_s15 + $0xb8] sm:$0xff] }
  0x1b   : > { %1636 = vpow2.f32 %v342_v36  ;;  %v358_v27 = vmul.f32 1.442695, %v266_v11  ;;  %v270_v28 = vsub.f32 0.0, %v195_v16  ;;  %v196_v29 = vld [vmem:[%s1958_s15 + $0xb0] sm:$0xff]  ;;  %v356_v32 = vmul.f32 1.442695, %v265_v15 }
  0x1c   : > { %1638 = vpow2.f32 %v340_v39  ;;  %v269_v33 = vsub.f32 0.0, %v194_v20  ;;  %v199_v34 = vld [vmem:[%s1958_s15 + $0xc8] sm:$0xff]  ;;  %v362_v36 = vmul.f32 1.442695, %v268_v19  ;;  %v272_v37 = vsub.f32 0.0, %v197_v24  ;;  %v198_v38 = vld [vmem:[%s1958_s15 + $0xc0] sm:$0xff] }
  0x1d   : > { %1640 = vpow2.f32 %v346_v41  ;;  %v360_v40 = vmul.f32 1.442695, %v267_v23  ;;  %v271_v41 = vsub.f32 0.0, %v196_v29  ;;  %v201_v42 = vld [vmem:[%s1958_s15 + $0xd8] sm:$0xff]  ;;  %v366_v44 = vmul.f32 1.442695, %v270_v28 }
  0x1e   : > { %1642 = vpow2.f32 %v344_v43 }
  0x1f   : > { %1644 = vpow2.f32 %v350_v45  ;;  %v274_v45 = vsub.f32 0.0, %v199_v34  ;;  %v207_v34 = vld [vmem:[%s1958_s15 + $0x108] sm:$0xff] }
  0x20   : > { %v1621_v49 = vpop.eup %1620  ;;  %1646 = vpow2.f32 %v348_v46  ;;  %v200_v46 = vld [vmem:[%s1958_s15 + $0xd0] sm:$0xff] }
  0x21   : > { %v1623_v50 = vpop.eup %1622  ;;  %v476_v51 = vadd.f32 1.0, %v1621_v49  ;;  %1648 = vpow2.f32 %v354_v47  ;;  %v273_v49 = vsub.f32 0.0, %v198_v38 }
  0x22   : > { %v1625_v52 = vpop.eup %1624  ;;  %v474_v53 = vadd.f32 1.0, %v1623_v50  ;;  %1650 = vpow2.f32 %v352_v48  ;;  %v364_v48 = vmul.f32 1.442695, %v269_v33  ;;  %v203_v50 = vld [vmem:[%s1958_s15 + $0xe8] sm:$0xff] }
  0x23   : > { %v1627_v54 = vpop.eup %1626  ;;  %1652 = vrcp.f32 %v476_v51  ;;  %v477_v55 = vadd.f32 1.0, %v1625_v52  ;;  %v370_v52 = vmul.f32 1.442695, %v272_v37  ;;  %v206_v37 = vld [vmem:[%s1958_s15 + $0x100] sm:$0xff] }
  0x24   : > { %v1629_v56 = vpop.eup %1628  ;;  %1654 = vrcp.f32 %v474_v53  ;;  %v475_v57 = vadd.f32 1.0, %v1627_v54  ;;  %v276_v53 = vsub.f32 0.0, %v201_v42  ;;  %v202_v54 = vld [vmem:[%s1958_s15 + $0xe0] sm:$0xff] }
  0x25   : > { %v1631_v58 = vpop.eup %1630  ;;  %1656 = vrcp.f32 %v477_v55  ;;  %v479_v59 = vadd.f32 1.0, %v1629_v56  ;;  %v368_v56 = vmul.f32 1.442695, %v271_v41 }
  0x26   : > { %v1633_v60 = vpop.eup %1632  ;;  %1658 = vrcp.f32 %v475_v57  ;;  %v478_v61 = vadd.f32 1.0, %v1631_v58  ;;  %v275_v57 = vsub.f32 0.0, %v200_v46  ;;  %v205_v58 = vld [vmem:[%s1958_s15 + $0xf8] sm:$0xff] }
  0x27   : > { %v1635_v62 = vpop.eup %1634  ;;  %1660 = vrcp.f32 %v479_v59  ;;  %v481_v63 = vadd.f32 1.0, %v1633_v60  ;;  %v374_v60 = vmul.f32 1.442695, %v274_v45 }
  0x28   : > { %v1637_v0 = vpop.eup %1636  ;;  %1662 = vrcp.f32 %v478_v61  ;;  %v480_v1 = vadd.f32 1.0, %v1635_v62  ;;  %v278_v61 = vsub.f32 0.0, %v203_v50  ;;  %v204_v62 = vld [vmem:[%s1958_s15 + $0xf0] sm:$0xff] }
  0x29   : > { %v1639_v3 = vpop.eup %1638  ;;  %1664 = vrcp.f32 %v481_v63  ;;  %v483_v4 = vadd.f32 1.0, %v1637_v0  ;;  %v372_v0 = vmul.f32 1.442695, %v273_v49 }
  0x2a   : > { %v1641_v6 = vpop.eup %1640  ;;  %1666 = vrcp.f32 %v480_v1  ;;  %v482_v7 = vadd.f32 1.0, %v1639_v3  ;;  %v277_v1 = vsub.f32 0.0, %v202_v54  ;;  %v378_v3 = vmul.f32 1.442695, %v276_v53 }
  0x2b   : > { %v1643_v9 = vpop.eup %1642  ;;  %1668 = vrcp.f32 %v483_v4  ;;  %v485_v10 = vadd.f32 1.0, %v1641_v6  ;;  %v280_v4 = vsub.f32 0.0, %v205_v58  ;;  %v376_v6 = vmul.f32 1.442695, %v275_v57 }
  0x2c   : > { %v1645_v13 = vpop.eup %1644  ;;  %1670 = vrcp.f32 %v482_v7  ;;  %v484_v14 = vadd.f32 1.0, %v1643_v9  ;;  %v279_v7 = vsub.f32 0.0, %v204_v62  ;;  %v382_v9 = vmul.f32 1.442695, %v278_v61  ;;  %v212_v61 = vld [vmem:[%s1958_s15 + $0x130] sm:$0xff] }
  0x2d   : > { %v1647_v17 = vpop.eup %1646  ;;  %1672 = vrcp.f32 %v485_v10  ;;  %v487_v18 = vadd.f32 1.0, %v1645_v13  ;;  %v380_v11 = vmul.f32 1.442695, %v277_v1  ;;  %v386_v13 = vmul.f32 1.442695, %v280_v4 }
  0x2e   : > { %v1649_v21 = vpop.eup %1648  ;;  %1674 = vrcp.f32 %v484_v14  ;;  %v486_v22 = vadd.f32 1.0, %v1647_v17  ;;  %v384_v15 = vmul.f32 1.442695, %v279_v7 }
  0x2f   : > { %v1651_v25 = vpop.eup %1650  ;;  %1676 = vrcp.f32 %v487_v18  ;;  %v489_v26 = vadd.f32 1.0, %v1649_v21 }
  0x30   : > { %v1653_v30 = vpop.eup %1652  ;;  %1678 = vrcp.f32 %v486_v22  ;;  %v488_v31 = vadd.f32 1.0, %v1651_v25 }
  0x31   : > { %v1655_v35 = vpop.eup %1654  ;;  %861 = vperm.xlu1 %1619, %v1653_v30   ;;  %1680 = vrcp.f32 %v489_v26 }
  0x32   : > { %v1657_v39 = vpop.eup %1656  ;;  %851 = vperm.xlu0 %1618, %v1655_v35   ;;  %1682 = vrcp.f32 %v488_v31 }
  0x33   : > { %v1659_v43 = vpop.eup %1658  ;;  %1684 = vpow2.f32 %v358_v27 }
  0x34   : > { %v1661_v47 = vpop.eup %1660  ;;  %1686 = vpow2.f32 %v356_v32 }
  0x35   : > { %v1663_v51 = vpop.eup %1662  ;;  %866 = vperm.xlu1 %1619, %v1657_v39   ;;  %1688 = vpow2.f32 %v362_v36 }
  0x36   : > { %v1665_v55 = vpop.eup %1664  ;;  %856 = vperm.xlu0 %1618, %v1659_v43   ;;  %1690 = vpow2.f32 %v360_v40  ;;  %v209_v40 = vld [vmem:[%s1958_s15 + $0x118] sm:$0xff]  ;;  %v282_v43 = vsub.f32 0.0, %v207_v34 }
  0x37   : > { %v1667_v59 = vpop.eup %1666  ;;  %1692 = vpow2.f32 %v366_v44  ;;  %v208_v44 = vld [vmem:[%s1958_s15 + $0x110] sm:$0xff] }
  0x38   : > { %v1669_v63 = vpop.eup %1668  ;;  %1694 = vpow2.f32 %v364_v48  ;;  %v211_v48 = vld [vmem:[%s1958_s15 + $0x128] sm:$0xff] }
  0x39   : > { %v1671_v2 = vpop.eup %1670  ;;  %876 = vperm.xlu1 %1619, %v1661_v47   ;;  %1696 = vpow2.f32 %v370_v52  ;;  %v281_v47 = vsub.f32 0.0, %v206_v37  ;;  %v210_v52 = vld [vmem:[%s1958_s15 + $0x120] sm:$0xff] }
  0x3a   : > { %v1673_v5 = vpop.eup %1672  ;;  %871 = vperm.xlu0 %1618, %v1663_v51   ;;  %1698 = vpow2.f32 %v368_v56  ;;  %v284_v51 = vsub.f32 0.0, %v209_v40  ;;  %v213_v56 = vld [vmem:[%s1958_s15 + $0x138] sm:$0xff]  ;;  %v285_v1 = vsub.f32 0.0, %v210_v52 }
  0x3b   : > { %v1675_v8 = vpop.eup %1674  ;;  %1700 = vpow2.f32 %v374_v60  ;;  %v286_v60 = vsub.f32 0.0, %v211_v48 }
  0x3c   : > { %v1677_v10 = vpop.eup %1676  ;;  %1702 = vpow2.f32 %v372_v0  ;;  %v388_v0 = vmul.f32 1.442695, %v281_v47  ;;  %v394_v4 = vmul.f32 1.442695, %v284_v51 }
  0x3d   : > { %v1679_v12 = vpop.eup %1678  ;;  %886 = vperm.xlu1 %1619, %v1665_v55   ;;  %1704 = vpow2.f32 %v378_v3  ;;  %v283_v55 = vsub.f32 0.0, %v208_v44 }
  0x3e   : > { %v1681_v14 = vpop.eup %1680  ;;  %881 = vperm.xlu0 %1618, %v1667_v59   ;;  %1706 = vpow2.f32 %v376_v6  ;;  %v390_v59 = vmul.f32 1.442695, %v282_v43  ;;  %v214_v6 = vld [vmem:[%s1958_s15 + $0x140] sm:$0xff] }
  0x3f   : > { %v1683_v16 = vpop.eup %1682  ;;  %1708 = vpow2.f32 %v382_v9  ;;  %v287_v9 = vsub.f32 0.0, %v212_v61 }
  0x40   : > { %v1685_v17 = vpop.eup %1684  ;;  %1710 = vpow2.f32 %v380_v11 }
  0x41   : > { %v1687_v18 = vpop.eup %1686  ;;  %896 = vperm.xlu1 %1619, %v1669_v63   ;;  %v491_v19 = vadd.f32 1.0, %v1685_v17  ;;  %1712 = vpow2.f32 %v386_v13  ;;  %v289_v17 = vsub.f32 0.0, %v214_v6 }
  0x42   : > { %v1689_v20 = vpop.eup %1688  ;;  %891 = vperm.xlu0 %1618, %v1671_v2   ;;  %v490_v21 = vadd.f32 1.0, %v1687_v18  ;;  %1714 = vpow2.f32 %v384_v15  ;;  %v215_v2 = vld [vmem:[%s1958_s15 + $0x148] sm:$0xff] }
  0x43   : > { %v1691_v22 = vpop.eup %1690  ;;  %1716 = vrcp.f32 %v491_v19  ;;  %v493_v23 = vadd.f32 1.0, %v1689_v20  ;;  %v290_v13 = vsub.f32 0.0, %v215_v2  ;;  %v219_v18 = vld [vmem:[%s1958_s15 + $0x168] sm:$0xff] }
  0x44   : > { %v1693_v24 = vpop.eup %1692  ;;  %1718 = vrcp.f32 %v490_v21  ;;  %v492_v25 = vadd.f32 1.0, %v1691_v22  ;;  %v218_v22 = vld [vmem:[%s1958_s15 + $0x160] sm:$0xff]  ;;  %v223_v2 = vld [vmem:[%s1958_s15 + $0x188] sm:$0xff] }
  0x45   : > { %v1695_v26 = vpop.eup %1694  ;;  %906 = vperm.xlu1 %1619, %v1673_v5   ;;  %1720 = vrcp.f32 %v493_v23  ;;  %v495_v27 = vadd.f32 1.0, %v1693_v24  ;;  %v288_v5 = vsub.f32 0.0, %v213_v56  ;;  %v400_v24 = vmul.f32 1.442695, %v287_v9 }
  0x46   : > { %v1697_v28 = vpop.eup %1696  ;;  %901 = vperm.xlu0 %1618, %v1675_v8   ;;  %1722 = vrcp.f32 %v492_v25  ;;  %v494_v29 = vadd.f32 1.0, %v1695_v26  ;;  %v392_v8 = vmul.f32 1.442695, %v283_v55  ;;  %v221_v26 = vld [vmem:[%s1958_s15 + $0x178] sm:$0xff] }
  0x47   : > { %v1699_v30 = vpop.eup %1698  ;;  %1724 = vrcp.f32 %v495_v27  ;;  %v497_v31 = vadd.f32 1.0, %v1697_v28  ;;  %v402_v20 = vmul.f32 1.442695, %v288_v5  ;;  %v406_v28 = vmul.f32 1.442695, %v290_v13  ;;  %v222_v5 = vld [vmem:[%s1958_s15 + $0x180] sm:$0xff] }
  0x48   : > { %v1701_v32 = vpop.eup %1700  ;;  %1726 = vrcp.f32 %v494_v29  ;;  %v496_v33 = vadd.f32 1.0, %v1699_v30  ;;  %v294_v29 = vsub.f32 0.0, %v219_v18  ;;  %v220_v30 = vld [vmem:[%s1958_s15 + $0x170] sm:$0xff] }
  0x49   : > { %v1703_v35 = vpop.eup %1702  ;;  %916 = vperm.xlu1 %1619, %v1677_v10   ;;  %1728 = vrcp.f32 %v497_v31  ;;  %v499_v36 = vadd.f32 1.0, %v1701_v32  ;;  %v217_v10 = vld [vmem:[%s1958_s15 + $0x158] sm:$0xff]  ;;  %v404_v32 = vmul.f32 1.442695, %v289_v17 }
  0x4a   : > { %v1705_v38 = vpop.eup %1704  ;;  %911 = vperm.xlu0 %1618, %v1679_v12   ;;  %1730 = vrcp.f32 %v496_v33  ;;  %v498_v39 = vadd.f32 1.0, %v1703_v35  ;;  %v398_v12 = vmul.f32 1.442695, %v286_v60  ;;  %v292_v21 = vsub.f32 0.0, %v217_v10 }
  0x4b   : > { %v1707_v41 = vpop.eup %1706  ;;  %1732 = vrcp.f32 %v499_v36  ;;  %v501_v42 = vadd.f32 1.0, %v1705_v38  ;;  %v293_v33 = vsub.f32 0.0, %v218_v22  ;;  %v296_v36 = vsub.f32 0.0, %v221_v26 }
  0x4c   : > { %v1709_v45 = vpop.eup %1708  ;;  %1734 = vrcp.f32 %v498_v39  ;;  %v500_v46 = vadd.f32 1.0, %v1707_v41  ;;  %v410_v35 = vmul.f32 1.442695, %v292_v21  ;;  %v295_v39 = vsub.f32 0.0, %v220_v30 }
  0x4d   : > { %v1711_v49 = vpop.eup %1710  ;;  %926 = vperm.xlu1 %1619, %v1681_v14   ;;  %1736 = vrcp.f32 %v501_v42  ;;  %v503_v50 = vadd.f32 1.0, %v1709_v45  ;;  %v216_v14 = vld [vmem:[%s1958_s15 + $0x150] sm:$0xff]  ;;  %v414_v41 = vmul.f32 1.442695, %v294_v29  ;;  %v412_v43 = vmul.f32 1.442695, %v293_v33 }
  0x4e   : > { %v1713_v53 = vpop.eup %1712  ;;  %921 = vperm.xlu0 %1618, %v1683_v16   ;;  %1738 = vrcp.f32 %v500_v46  ;;  %v502_v54 = vadd.f32 1.0, %v1711_v49  ;;  %v396_v16 = vmul.f32 1.442695, %v285_v1  ;;  %v291_v25 = vsub.f32 0.0, %v216_v14  ;;  %v228_v29 = vld [vmem:[%s1958_s15 + $0x1b0] sm:$0xff] }
  0x4f   : > { %v1715_v57 = vpop.eup %1714  ;;  %1740 = vrcp.f32 %v503_v50  ;;  %v505_v58 = vadd.f32 1.0, %v1713_v53  ;;  %v418_v45 = vmul.f32 1.442695, %v296_v36  ;;  %v416_v47 = vmul.f32 1.442695, %v295_v39 }
  0x50   : > { %v1717_v62 = vpop.eup %1716  ;;  %1742 = vrcp.f32 %v502_v54  ;;  %v504_v63 = vadd.f32 1.0, %v1715_v57  ;;  %v408_v38 = vmul.f32 1.442695, %v291_v25 }
  0x51   : > { %v1719_v3 = vpop.eup %1718  ;;  %936 = vperm.xlu1 %1619, %v1717_v62   ;;  %1744 = vrcp.f32 %v505_v58 }
  0x52   : > { %v1721_v7 = vpop.eup %1720  ;;  %931 = vperm.xlu0 %1618, %v1719_v3   ;;  %1746 = vrcp.f32 %v504_v63 }
  0x53   : > { %v1723_v11 = vpop.eup %1722  ;;  %1748 = vpow2.f32 %v390_v59 }
  0x54   : > { %v1725_v15 = vpop.eup %1724  ;;  %1750 = vpow2.f32 %v388_v0 }
  0x55   : > { %v1727_v19 = vpop.eup %1726  ;;  %946 = vperm.xlu1 %1619, %v1721_v7   ;;  %1752 = vpow2.f32 %v394_v4 }
  0x56   : > { %v1729_v23 = vpop.eup %1728  ;;  %941 = vperm.xlu0 %1618, %v1723_v11   ;;  %1754 = vpow2.f32 %v392_v8  ;;  %v225_v8 = vld [vmem:[%s1958_s15 + $0x198] sm:$0xff]  ;;  %v298_v11 = vsub.f32 0.0, %v223_v2 }
  0x57   : > { %v1731_v27 = vpop.eup %1730  ;;  %1756 = vpow2.f32 %v398_v12  ;;  %v224_v12 = vld [vmem:[%s1958_s15 + $0x190] sm:$0xff] }
  0x58   : > { %v1733_v31 = vpop.eup %1732  ;;  %1758 = vpow2.f32 %v396_v16  ;;  %v227_v16 = vld [vmem:[%s1958_s15 + $0x1a8] sm:$0xff] }
  0x59   : > { %v1735_v34 = vpop.eup %1734  ;;  %956 = vperm.xlu1 %1619, %v1725_v15   ;;  %1760 = vpow2.f32 %v402_v20  ;;  %v297_v15 = vsub.f32 0.0, %v222_v5  ;;  %v226_v20 = vld [vmem:[%s1958_s15 + $0x1a0] sm:$0xff] }
  0x5a   : > { %v1737_v37 = vpop.eup %1736  ;;  %951 = vperm.xlu0 %1618, %v1727_v19   ;;  %1762 = vpow2.f32 %v400_v24  ;;  %v300_v19 = vsub.f32 0.0, %v225_v8  ;;  %v229_v24 = vld [vmem:[%s1958_s15 + $0x1b8] sm:$0xff]  ;;  %v301_v33 = vsub.f32 0.0, %v226_v20 }
  0x5b   : > { %v1739_v40 = vpop.eup %1738  ;;  %1764 = vpow2.f32 %v406_v28  ;;  %v302_v28 = vsub.f32 0.0, %v227_v16  ;;  %v237_v8 = vld [vmem:[%s1958_s15 + $0x1f8] sm:$0xff] }
  0x5c   : > { %v1741_v42 = vpop.eup %1740  ;;  %1766 = vpow2.f32 %v404_v32  ;;  %v420_v32 = vmul.f32 1.442695, %v297_v15  ;;  %v426_v36 = vmul.f32 1.442695, %v300_v19 }
  0x5d   : > { %v1743_v44 = vpop.eup %1742  ;;  %966 = vperm.xlu1 %1619, %v1729_v23   ;;  %1768 = vpow2.f32 %v410_v35  ;;  %v299_v23 = vsub.f32 0.0, %v224_v12 }
  0x5e   : > { %v1745_v46 = vpop.eup %1744  ;;  %961 = vperm.xlu0 %1618, %v1731_v27   ;;  %1770 = vpow2.f32 %v408_v38  ;;  %v422_v27 = vmul.f32 1.442695, %v298_v11  ;;  %v230_v38 = vld [vmem:[%s1958_s15 + $0x1c0] sm:$0xff] }
  0x5f   : > { %v1747_v48 = vpop.eup %1746  ;;  %1772 = vpow2.f32 %v414_v41  ;;  %v303_v41 = vsub.f32 0.0, %v228_v29 }
  0x60   : > { %v1749_v49 = vpop.eup %1748  ;;  %1774 = vpow2.f32 %v412_v43 }
  0x61   : > { %v1751_v50 = vpop.eup %1750  ;;  %976 = vperm.xlu1 %1619, %v1733_v31   ;;  %v507_v51 = vadd.f32 1.0, %v1749_v49  ;;  %1776 = vpow2.f32 %v418_v45  ;;  %v305_v49 = vsub.f32 0.0, %v230_v38 }
  0x62   : > { %v1753_v52 = vpop.eup %1752  ;;  %971 = vperm.xlu0 %1618, %v1735_v34   ;;  %v506_v53 = vadd.f32 1.0, %v1751_v50  ;;  %1778 = vpow2.f32 %v416_v47  ;;  %v231_v34 = vld [vmem:[%s1958_s15 + $0x1c8] sm:$0xff] }
  0x63   : > { %v1755_v54 = vpop.eup %1754  ;;  %1780 = vrcp.f32 %v507_v51  ;;  %v509_v55 = vadd.f32 1.0, %v1753_v52  ;;  %v306_v45 = vsub.f32 0.0, %v231_v34  ;;  %v235_v50 = vld [vmem:[%s1958_s15 + $0x1e8] sm:$0xff] }
  0x64   : > { %v1757_v56 = vpop.eup %1756  ;;  %1782 = vrcp.f32 %v506_v53  ;;  %v508_v57 = vadd.f32 1.0, %v1755_v54  ;;  %v234_v54 = vld [vmem:[%s1958_s15 + $0x1e0] sm:$0xff]  ;;  %v239_v34 = vld [vmem:[%s1958_s15 + $0x208] sm:$0xff] }
  0x65   : > { %v1759_v58 = vpop.eup %1758  ;;  %986 = vperm.xlu1 %1619, %v1737_v37   ;;  %1784 = vrcp.f32 %v509_v55  ;;  %v511_v59 = vadd.f32 1.0, %v1757_v56  ;;  %v304_v37 = vsub.f32 0.0, %v229_v24  ;;  %v432_v56 = vmul.f32 1.442695, %v303_v41 }
  0x66   : > { %v1761_v60 = vpop.eup %1760  ;;  %981 = vperm.xlu0 %1618, %v1739_v40   ;;  %1786 = vrcp.f32 %v508_v57  ;;  %v510_v61 = vadd.f32 1.0, %v1759_v58  ;;  %v424_v40 = vmul.f32 1.442695, %v299_v23 }
  0x67   : > { %v1763_v62 = vpop.eup %1762  ;;  %1788 = vrcp.f32 %v511_v59  ;;  %v513_v63 = vadd.f32 1.0, %v1761_v60  ;;  %v434_v52 = vmul.f32 1.442695, %v304_v37  ;;  %v438_v59 = vmul.f32 1.442695, %v306_v45  ;;  %v238_v37 = vld [vmem:[%s1958_s15 + $0x200] sm:$0xff] }
  0x68   : > { %v1765_v0 = vpop.eup %1764  ;;  %1790 = vrcp.f32 %v510_v61  ;;  %v512_v1 = vadd.f32 1.0, %v1763_v62  ;;  %v310_v60 = vsub.f32 0.0, %v235_v50  ;;  %v436_v62 = vmul.f32 1.442695, %v305_v49 }
  0x69   : > { %v1767_v3 = vpop.eup %1766  ;;  %996 = vperm.xlu1 %1619, %v1741_v42   ;;  %1792 = vrcp.f32 %v513_v63  ;;  %v515_v4 = vadd.f32 1.0, %v1765_v0  ;;  %v233_v42 = vld [vmem:[%s1958_s15 + $0x1d8] sm:$0xff]  ;;  %v309_v63 = vsub.f32 0.0, %v234_v54 }
  0x6a   : > { %v1769_v6 = vpop.eup %1768  ;;  %991 = vperm.xlu0 %1618, %v1743_v44   ;;  %1794 = vrcp.f32 %v512_v1  ;;  %v514_v7 = vadd.f32 1.0, %v1767_v3  ;;  %v430_v44 = vmul.f32 1.442695, %v302_v28  ;;  %v308_v53 = vsub.f32 0.0, %v233_v42 }
  0x6b   : > { %v1771_v9 = vpop.eup %1770  ;;  %1796 = vrcp.f32 %v515_v4  ;;  %v517_v10 = vadd.f32 1.0, %v1769_v6  ;;  %v446_v5 = vmul.f32 1.442695, %v310_v60 }
  0x6c   : > { %v1773_v13 = vpop.eup %1772  ;;  %1798 = vrcp.f32 %v514_v7  ;;  %v516_v14 = vadd.f32 1.0, %v1771_v9  ;;  %v442_v1 = vmul.f32 1.442695, %v308_v53  ;;  %v444_v7 = vmul.f32 1.442695, %v309_v63 }
  0x6d   : > { %v1775_v17 = vpop.eup %1774  ;;  %1006 = vperm.xlu1 %1619, %v1745_v46   ;;  %1800 = vrcp.f32 %v517_v10  ;;  %v519_v18 = vadd.f32 1.0, %v1773_v13  ;;  %v232_v46 = vld [vmem:[%s1958_s15 + $0x1d0] sm:$0xff]  ;;  %v312_v13 = vsub.f32 0.0, %v237_v8 }
  0x6e   : > { %v1777_v21 = vpop.eup %1776  ;;  %1001 = vperm.xlu0 %1618, %v1747_v48   ;;  %1802 = vrcp.f32 %v516_v14  ;;  %v518_v22 = vadd.f32 1.0, %v1775_v17  ;;  %v428_v48 = vmul.f32 1.442695, %v301_v33  ;;  %v307_v57 = vsub.f32 0.0, %v232_v46  ;;  %v236_v10 = vld [vmem:[%s1958_s15 + $0x1f0] sm:$0xff] }
  0x6f   : > { %v1779_v25 = vpop.eup %1778  ;;  %1804 = vrcp.f32 %v519_v18  ;;  %v521_v26 = vadd.f32 1.0, %v1777_v21  ;;  %v311_v15 = vsub.f32 0.0, %v236_v10 }
  0x70   : > { %v1781_v30 = vpop.eup %1780  ;;  %1806 = vrcp.f32 %v518_v22  ;;  %v520_v31 = vadd.f32 1.0, %v1779_v25  ;;  %v440_v3 = vmul.f32 1.442695, %v307_v57  ;;  %v450_v22 = vmul.f32 1.442695, %v312_v13 }
  0x71   : > { %v1783_v35 = vpop.eup %1782  ;;  %1016 = vperm.xlu1 %1619, %v1781_v30   ;;  %1808 = vrcp.f32 %v521_v26  ;;  %v448_v25 = vmul.f32 1.442695, %v311_v15 }
  0x72   : > { %v1785_v39 = vpop.eup %1784  ;;  %1011 = vperm.xlu0 %1618, %v1783_v35   ;;  %1810 = vrcp.f32 %v520_v31 }
  0x73   : > { %v1787_v43 = vpop.eup %1786  ;;  %1812 = vpow2.f32 %v422_v27 }
  0x74   : > { %v1789_v47 = vpop.eup %1788  ;;  %1814 = vpow2.f32 %v420_v32 }
  0x75   : > { %v1791_v51 = vpop.eup %1790  ;;  %1026 = vperm.xlu1 %1619, %v1785_v39   ;;  %1816 = vpow2.f32 %v426_v36 }
  0x76   : > { %v1793_v55 = vpop.eup %1792  ;;  %1021 = vperm.xlu0 %1618, %v1787_v43   ;;  %1818 = vpow2.f32 %v424_v40  ;;  %v241_v40 = vld [vmem:[%s1958_s15 + $0x218] sm:$0xff]  ;;  %v314_v43 = vsub.f32 0.0, %v239_v34 }
  0x77   : > { %v1795_v58 = vpop.eup %1794  ;;  %1820 = vpow2.f32 %v430_v44  ;;  %v240_v44 = vld [vmem:[%s1958_s15 + $0x210] sm:$0xff] }
  0x78   : > { %v1797_v61 = vpop.eup %1796  ;;  %1822 = vpow2.f32 %v428_v48  ;;  %v243_v48 = vld [vmem:[%s1958_s15 + $0x228] sm:$0xff]  ;;  %v315_v54 = vsub.f32 0.0, %v240_v44 }
  0x79   : > { %v1799_v0 = vpop.eup %1798  ;;  %1036 = vperm.xlu1 %1619, %v1789_v47   ;;  %1824 = vpow2.f32 %v434_v52  ;;  %v313_v47 = vsub.f32 0.0, %v238_v37  ;;  %v242_v52 = vld [vmem:[%s1958_s15 + $0x220] sm:$0xff]  ;;  %v318_v57 = vsub.f32 0.0, %v243_v48 }
  0x7a   : > { %v1801_v2 = vpop.eup %1800  ;;  %1031 = vperm.xlu0 %1618, %v1791_v51   ;;  %1826 = vpow2.f32 %v432_v56  ;;  %v316_v51 = vsub.f32 0.0, %v241_v40  ;;  %v454_v56 = vmul.f32 1.442695, %v314_v43 }
  0x7b   : > { %v1803_v4 = vpop.eup %1802  ;;  %1828 = vpow2.f32 %v438_v59  ;;  %v452_v60 = vmul.f32 1.442695, %v313_v47 }
  0x7c   : > { %v1805_v6 = vpop.eup %1804  ;;  %1830 = vpow2.f32 %v436_v62  ;;  %v458_v63 = vmul.f32 1.442695, %v316_v51  ;;  %v704_v51 = vld [vmem:[%s2039_s19 + $0x28] sm:$0xff] }
  0x7d   : > { %v1807_v9 = vpop.eup %1806  ;;  %1046 = vperm.xlu1 %1619, %v1793_v55   ;;  %1832 = vpow2.f32 %v442_v1  ;;  %v245_v55 = vld [vmem:[%s1958_s15 + $0x238] sm:$0xff] }
  0x7e   : > { %v1809_v11 = vpop.eup %1808  ;;  %1041 = vperm.xlu0 %1618, %v1795_v58   ;;  %1834 = vpow2.f32 %v440_v3  ;;  %v244_v58 = vld [vmem:[%s1958_s15 + $0x230] sm:$0xff] }
  0x7f   : > { %v1811_v12 = vpop.eup %1810  ;;  %1836 = vpow2.f32 %v446_v5  ;;  %v319_v3 = vsub.f32 0.0, %v244_v58 }
  0x80   : > { %v1813_v14 = vpop.eup %1812  ;;  %1838 = vpow2.f32 %v444_v7  ;;  %v246_v7 = vld [vmem:[%s1958_s15 + $0x240] sm:$0xff] }
  0x81   : > { %v1815_v16 = vpop.eup %1814  ;;  %1056 = vperm.xlu1 %1619, %v1797_v61   ;;  %v523_v17 = vadd.f32 1.0, %v1813_v14  ;;  %v317_v61 = vsub.f32 0.0, %v242_v52  ;;  %v464_v14 = vmul.f32 1.442695, %v319_v3  ;;  %v321_v15 = vsub.f32 0.0, %v246_v7  ;;  %v701_v3 = vld [vmem:[%s2039_s19 + $0x10] sm:$0xff] }
  0x82   : > { %v1817_v18 = vpop.eup %1816  ;;  %1051 = vperm.xlu0 %1618, %v1799_v0   ;;  %v522_v19 = vadd.f32 1.0, %v1815_v16  ;;  %v320_v0 = vsub.f32 0.0, %v245_v55  ;;  %v700_v55 = vld [vmem:[%s2039_s19 + $0x8] sm:$0xff] }
  0x83   : > { %v1819_v20 = vpop.eup %1818  ;;  %1840 = vrcp.f32 %v523_v17  ;;  %v525_v21 = vadd.f32 1.0, %v1817_v18  ;;  %v248_v18 = vld [vmem:[%s1958_s15 + $0x250] sm:$0xff] }
  0x84   : > { %v1821_v23 = vpop.eup %1820  ;;  %1842 = vrcp.f32 %v522_v19  ;;  %v524_v24 = vadd.f32 1.0, %v1819_v20 }
  0x85   : > { %v1823_v26 = vpop.eup %1822  ;;  %1066 = vperm.xlu1 %1619, %v1801_v2   ;;  %1844 = vrcp.f32 %v525_v21  ;;  %v527_v27 = vadd.f32 1.0, %v1821_v23  ;;  %v456_v2 = vmul.f32 1.442695, %v315_v54  ;;  %v699_v54 = vld [vmem:[%s2039_s19] sm:$0xff] }
  0x86   : > { %v1825_v28 = vpop.eup %1824  ;;  %1061 = vperm.xlu0 %1618, %v1803_v4   ;;  %1846 = vrcp.f32 %v524_v24  ;;  %v526_v29 = vadd.f32 1.0, %v1823_v26  ;;  %v247_v4 = vld [vmem:[%s1958_s15 + $0x248] sm:$0xff]  ;;  %v468_v24 = vmul.f32 1.442695, %v321_v15  ;;  %v710_v15 = vld [vmem:[%s2039_s19 + $0x58] sm:$0xff] }
  0x87   : > { %v1827_v30 = vpop.eup %1826  ;;  %v529_v31 = vadd.f32 1.0, %v1825_v28  ;;  %1848 = vpow2.f32 %v450_v22 }
  0x88   : > { %v1829_v32 = vpop.eup %1828  ;;  %v528_v33 = vadd.f32 1.0, %v1827_v30  ;;  %1850 = vpow2.f32 %v448_v25  ;;  %v323_v25 = vsub.f32 0.0, %v248_v18  ;;  %v707_v18 = vld [vmem:[%s2039_s19 + $0x40] sm:$0xff] }
  0x89   : > { %v1831_v35 = vpop.eup %1830  ;;  %1076 = vperm.xlu1 %1619, %v1805_v6   ;;  %1852 = vrcp.f32 %v527_v27  ;;  %v531_v36 = vadd.f32 1.0, %v1829_v32  ;;  %v462_v6 = vmul.f32 1.442695, %v318_v57 }
  0x8a   : > { %v1833_v38 = vpop.eup %1832  ;;  %1071 = vperm.xlu0 %1618, %v1807_v9   ;;  %1854 = vrcp.f32 %v526_v29  ;;  %v530_v39 = vadd.f32 1.0, %v1831_v35  ;;  %v460_v9 = vmul.f32 1.442695, %v317_v61  ;;  %v472_v30 = vmul.f32 1.442695, %v323_v25 }
  0x8b   : > { %v1835_v41 = vpop.eup %1834  ;;  %1856 = vrcp.f32 %v529_v31  ;;  %v533_v42 = vadd.f32 1.0, %v1833_v38 }
  0x8c   : > { %v1837_v45 = vpop.eup %1836  ;;  %1858 = vrcp.f32 %v528_v33  ;;  %v532_v46 = vadd.f32 1.0, %v1835_v41 }
  0x8d   : > { %v1839_v49 = vpop.eup %1838  ;;  %1086 = vperm.xlu1 %1619, %v1809_v11   ;;  %1860 = vrcp.f32 %v531_v36  ;;  %v535_v50 = vadd.f32 1.0, %v1837_v45  ;;  %v466_v11 = vmul.f32 1.442695, %v320_v0  ;;  %v706_v0 = vld [vmem:[%s2039_s19 + $0x38] sm:$0xff] }
  0x8e   : > { %1081 = vperm.xlu0 %1618, %v1811_v12   ;;  %1862 = vrcp.f32 %v530_v39  ;;  %v534_v53 = vadd.f32 1.0, %v1839_v49  ;;  %v322_v12 = vsub.f32 0.0, %v247_v4  ;;  %v702_v4 = vld [vmem:[%s2039_s19 + $0x18] sm:$0xff] }
  0x8f   : > { %1864 = vrcp.f32 %v533_v42 }
  0x90   : > { %v1841_v59 = vpop.eup %1840  ;;  %1866 = vrcp.f32 %v532_v46  ;;  %v470_v22 = vmul.f32 1.442695, %v322_v12 }
  0x91   : > { %v1843_v62 = vpop.eup %1842  ;;  %1096 = vperm.xlu1 %1619, %v1841_v59   ;;  %1868 = vrcp.f32 %v535_v50  ;;  %v703_v50 = vld [vmem:[%s2039_s19 + $0x20] sm:$0xff] }
  0x92   : > { %v1845_v1 = vpop.eup %1844  ;;  %1091 = vperm.xlu0 %1618, %v1843_v62   ;;  %1870 = vrcp.f32 %v534_v53 }
  0x93   : > { %v1847_v5 = vpop.eup %1846  ;;  %1872 = vpow2.f32 %v454_v56 }
  0x94   : > { %v1849_v8 = vpop.eup %1848  ;;  %1874 = vpow2.f32 %v452_v60 }
  0x95   : > { %v1851_v10 = vpop.eup %1850  ;;  %1106 = vperm.xlu1 %1619, %v1845_v1   ;;  %1876 = vpow2.f32 %v458_v63  ;;  %v537_v17 = vadd.f32 1.0, %v1849_v8  ;;  %v705_v63 = vld [vmem:[%s2039_s19 + $0x30] sm:$0xff] }
  0x96   : > { %v1853_v13 = vpop.eup %1852  ;;  %1101 = vperm.xlu0 %1618, %v1847_v5   ;;  %1878 = vpow2.f32 %v456_v2  ;;  %v536_v20 = vadd.f32 1.0, %v1851_v10 }
  0x97   : > { %v1855_v16 = vpop.eup %1854  ;;  %1880 = vpow2.f32 %v462_v6 }
  0x98   : > { %v1857_v19 = vpop.eup %1856  ;;  %1882 = vpow2.f32 %v460_v9 }
  0x99   : > { %v1859_v21 = vpop.eup %1858  ;;  %1116 = vperm.xlu1 %1619, %v1853_v13   ;;  %1884 = vpow2.f32 %v466_v11 }
  0x9a   : > { %v1861_v23 = vpop.eup %1860  ;;  %1111 = vperm.xlu0 %1618, %v1855_v16   ;;  %1886 = vpow2.f32 %v464_v14  ;;  %v709_v14 = vld [vmem:[%s2039_s19 + $0x50] sm:$0xff] }
  0x9b   : > { %v1863_v26 = vpop.eup %1862  ;;  %1888 = vrcp.f32 %v537_v17 }
  0x9c   : > { %v1865_v27 = vpop.eup %1864  ;;  %1890 = vrcp.f32 %v536_v20 }
  0x9d   : > { %v1867_v28 = vpop.eup %1866  ;;  %1126 = vperm.xlu1 %1619, %v1857_v19   ;;  %1892 = vpow2.f32 %v470_v22  ;;  %v708_v19 = vld [vmem:[%s2039_s19 + $0x48] sm:$0xff] }
  0x9e   : > { %v1869_v29 = vpop.eup %1868  ;;  %1121 = vperm.xlu0 %1618, %v1859_v21   ;;  %1894 = vpow2.f32 %v468_v24 }
  0x9f   : > { %v1871_v31 = vpop.eup %1870  ;;  %1896 = vpow2.f32 %v472_v30  ;;  %v711_v30 = vld [vmem:[%s2039_s19 + $0x60] sm:$0xff] }
  0xa0   : > { %v1873_v32 = vpop.eup %1872 }
  0xa1   : > { %v1875_v33 = vpop.eup %1874  ;;  %1136 = vperm.xlu1 %1619, %v1861_v23   ;;  %v539_v34 = vadd.f32 1.0, %v1873_v32 }
  0xa2   : > { %v1877_v35 = vpop.eup %1876  ;;  %1131 = vperm.xlu0 %1618, %v1863_v26   ;;  %v538_v36 = vadd.f32 1.0, %v1875_v33 }
  0xa3   : > { %v1879_v37 = vpop.eup %1878  ;;  %1898 = vrcp.f32 %v539_v34  ;;  %v541_v38 = vadd.f32 1.0, %v1877_v35 }
  0xa4   : > { %v1881_v39 = vpop.eup %1880  ;;  %1900 = vrcp.f32 %v538_v36  ;;  %v540_v40 = vadd.f32 1.0, %v1879_v37 }
  0xa5   : > { %v1883_v41 = vpop.eup %1882  ;;  %1146 = vperm.xlu1 %1619, %v1865_v27   ;;  %1902 = vrcp.f32 %v541_v38  ;;  %v543_v42 = vadd.f32 1.0, %v1881_v39  ;;  %v713_v27 = vld [vmem:[%s2039_s19 + $0x70] sm:$0xff] }
  0xa6   : > { %v1885_v43 = vpop.eup %1884  ;;  %1141 = vperm.xlu0 %1618, %v1867_v28   ;;  %1904 = vrcp.f32 %v540_v40  ;;  %v542_v44 = vadd.f32 1.0, %v1883_v41  ;;  %v714_v28 = vld [vmem:[%s2039_s19 + $0x78] sm:$0xff]  ;;  %v717_v39 = vld [vmem:[%s2039_s19 + $0x90] sm:$0xff] }
  0xa7   : > { %v1887_v45 = vpop.eup %1886  ;;  %1906 = vrcp.f32 %v543_v42  ;;  %v545_v48 = vadd.f32 1.0, %v1885_v43  ;;  %v718_v40 = vld [vmem:[%s2039_s19 + $0x98] sm:$0xff]  ;;  %v715_v42 = vld [vmem:[%s2039_s19 + $0x80] sm:$0xff]  ;;  %v716_v43 = vld [vmem:[%s2039_s19 + $0x88] sm:$0xff] }
  0xa8   : > { %v1889_v46 = vpop.eup %1888  ;;  %1908 = vrcp.f32 %v542_v44  ;;  %v544_v52 = vadd.f32 1.0, %v1887_v45 }
  0xa9   : > { %v1891_v47 = vpop.eup %1890  ;;  %1156 = vperm.xlu1 %1619, %v1869_v29   ;;  %1910 = vrcp.f32 %v545_v48 }
  0xaa   : > { %v1893_v49 = vpop.eup %1892  ;;  %1151 = vperm.xlu0 %1618, %v1871_v31   ;;  %1912 = vrcp.f32 %v544_v52  ;;  %v712_v31 = vld [vmem:[%s2039_s19 + $0x68] sm:$0xff]  ;;  %v722_v52 = vld [vmem:[%s2039_s19 + $0xb8] sm:$0xff] }
  0xab   : > { %v1895_v53 = vpop.eup %1894  ;;  %v547_v60 = vadd.f32 1.0, %v1893_v49 }
  0xac   : > { %v862_v56 = vpop.permute.xlu1 %861  ;;  %v546_v1 = vadd.f32 1.0, %v1895_v53  ;;  %v1897_v2 = vpop.eup %1896 }
  0xad   : > { %v1228_v57 = vmul.f32 %v862_v56, %v703_v50  ;;  %v1229_v58 = vmul.f32 %v862_v56, %v704_v51  ;;  %v852_v59 = vpop.permute.xlu0 %851  ;;  %1166 = vperm.xlu1 %1619, %v1889_v46   ;;  %1914 = vrcp.f32 %v547_v60  ;;  %v548_v16 = vadd.f32 1.0, %v1897_v2  ;;  %v721_v51 = vld [vmem:[%s2039_s19 + $0xb0] sm:$0xff]  ;;  %v724_v2 = vld [vmem:[%s2039_s19 + $0xc8] sm:$0xff] }
  0xae   : > { %v1224_v61 = vmul.f32 %v852_v59, %v699_v54  ;;  %v1225_v62 = vmul.f32 %v852_v59, %v700_v55  ;;  %1161 = vperm.xlu0 %1618, %v1891_v47   ;;  %1916 = vrcp.f32 %v546_v1  ;;  %v719_v54 = vld [vmem:[%s2039_s19 + $0xa0] sm:$0xff]  ;;  %v720_v55 = vld [vmem:[%s2039_s19 + $0xa8] sm:$0xff] }
  0xaf   : > { %1379 = vst [vmem:[%s2048_s22 + $0x20] sm:$0xff] %v1228_v57  ;;  %1380 = vst.msk [vmem:[%s2048_s22 + $0x28] sm:$0xff] %vm1375_vm0, %v1229_v58  ;;  %1918 = vrcp.f32 %v548_v16  ;;  %v723_v1 = vld [vmem:[%s2039_s19 + $0xc0] sm:$0xff] }
  0xb0   : > { %v1899_v5 = vpop.eup %1898  ;;  %1374 = vst [vmem:[%s2048_s22] sm:$0xff] %v1224_v61  ;;  %1376 = vst.msk [vmem:[%s2048_s22 + $0x8] sm:$0xff] %vm1375_vm0, %v1225_v62  ;;  %v867_v6 = vpop.permute.xlu1 %866  ;;  %v725_v62 = vld [vmem:[%s2039_s19 + $0xd0] sm:$0xff] }
  0xb1   : > { %v1901_v7 = vpop.eup %1900  ;;  %v1230_v8 = vmul.f32 %v867_v6, %v705_v63  ;;  %v1231_v9 = vmul.f32 %v867_v6, %v706_v0  ;;  %v857_v10 = vpop.permute.xlu0 %856  ;;  %1176 = vperm.xlu1 %1619, %v1899_v5   ;;  %v726_v63 = vld [vmem:[%s2039_s19 + $0xd8] sm:$0xff] }
  0xb2   : > { %v1903_v11 = vpop.eup %1902  ;;  %v1226_v12 = vmul.f32 %v857_v10, %v701_v3  ;;  %v1227_v13 = vmul.f32 %v857_v10, %v702_v4  ;;  %1171 = vperm.xlu0 %1618, %v1901_v7   ;;  %v730_v10 = vld [vmem:[%s2039_s19 + $0xf8] sm:$0xff] }
  0xb3   : > { %v1905_v17 = vpop.eup %1904  ;;  %1381 = vst [vmem:[%s2048_s22 + $0x30] sm:$0xff] %v1230_v8  ;;  %1382 = vst.msk [vmem:[%s2048_s22 + $0x38] sm:$0xff] %vm1375_vm0, %v1231_v9  ;;  %v729_v9 = vld [vmem:[%s2039_s19 + $0xf0] sm:$0xff] }
  0xb4   : > { %1377 = vst [vmem:[%s2048_s22 + $0x10] sm:$0xff] %v1226_v12  ;;  %1378 = vst.msk [vmem:[%s2048_s22 + $0x18] sm:$0xff] %vm1375_vm0, %v1227_v13  ;;  %v877_v20 = vpop.permute.xlu1 %876  ;;  %v1907_v24 = vpop.eup %1906  ;;  %v728_v12 = vld [vmem:[%s2039_s19 + $0xe8] sm:$0xff] }
  0xb5   : > { %v1234_v21 = vmul.f32 %v877_v20, %v709_v14  ;;  %v1235_v22 = vmul.f32 %v877_v20, %v710_v15  ;;  %v872_v23 = vpop.permute.xlu0 %871  ;;  %1186 = vperm.xlu1 %1619, %v1903_v11   ;;  %v1909_v29 = vpop.eup %1908  ;;  %v727_v11 = vld [vmem:[%s2039_s19 + $0xe0] sm:$0xff]  ;;  %v734_v20 = vld [vmem:[%s2039_s19 + $0x118] sm:$0xff] }
  0xb6   : > { %v1232_v25 = vmul.f32 %v872_v23, %v707_v18  ;;  %v1233_v26 = vmul.f32 %v872_v23, %v708_v19  ;;  %1181 = vperm.xlu0 %1618, %v1905_v17   ;;  %v1911_v36 = vpop.eup %1910  ;;  %v733_v19 = vld [vmem:[%s2039_s19 + $0x110] sm:$0xff] }
  0xb7   : > { %1385 = vst [vmem:[%s2048_s22 + $0x50] sm:$0xff] %v1234_v21  ;;  %1386 = vst.msk [vmem:[%s2048_s22 + $0x58] sm:$0xff] %vm1375_vm0, %v1235_v22  ;;  %v1913_v41 = vpop.eup %1912  ;;  %v731_v21 = vld [vmem:[%s2039_s19 + $0x100] sm:$0xff]  ;;  %v732_v22 = vld [vmem:[%s2039_s19 + $0x108] sm:$0xff] }
  0xb8   : > { %1383 = vst [vmem:[%s2048_s22 + $0x40] sm:$0xff] %v1232_v25  ;;  %1384 = vst.msk [vmem:[%s2048_s22 + $0x48] sm:$0xff] %vm1375_vm0, %v1233_v26  ;;  %v887_v32 = vpop.permute.xlu1 %886 }
  0xb9   : > { %v1238_v33 = vmul.f32 %v887_v32, %v713_v27  ;;  %v1239_v34 = vmul.f32 %v887_v32, %v714_v28  ;;  %v882_v35 = vpop.permute.xlu0 %881  ;;  %1196 = vperm.xlu1 %1619, %v1907_v24   ;;  %v736_v32 = vld [vmem:[%s2039_s19 + $0x128] sm:$0xff] }
  0xba   : > { %v1236_v37 = vmul.f32 %v882_v35, %v711_v30  ;;  %v1237_v38 = vmul.f32 %v882_v35, %v712_v31  ;;  %1191 = vperm.xlu0 %1618, %v1909_v29   ;;  %v1915_v48 = vpop.eup %1914  ;;  %v737_v29 = vld [vmem:[%s2039_s19 + $0x130] sm:$0xff]  ;;  %v738_v30 = vld [vmem:[%s2039_s19 + $0x138] sm:$0xff]  ;;  %v735_v31 = vld [vmem:[%s2039_s19 + $0x120] sm:$0xff] }
  0xbb   : > { %1389 = vst [vmem:[%s2048_s22 + $0x70] sm:$0xff] %v1238_v33  ;;  %1390 = vst.msk [vmem:[%s2048_s22 + $0x78] sm:$0xff] %vm1375_vm0, %v1239_v34  ;;  %v1917_v53 = vpop.eup %1916 }
  0xbc   : > { %1387 = vst [vmem:[%s2048_s22 + $0x60] sm:$0xff] %v1236_v37  ;;  %1388 = vst.msk [vmem:[%s2048_s22 + $0x68] sm:$0xff] %vm1375_vm0, %v1237_v38  ;;  %v897_v44 = vpop.permute.xlu1 %896  ;;  %v1919_v0 = vpop.eup %1918 }
  0xbd   : > { %v1242_v45 = vmul.f32 %v897_v44, %v717_v39  ;;  %v1243_v46 = vmul.f32 %v897_v44, %v718_v40  ;;  %v892_v47 = vpop.permute.xlu0 %891  ;;  %1206 = vperm.xlu1 %1619, %v1911_v36   ;;  %v741_v39 = vld [vmem:[%s2039_s19 + $0x150] sm:$0xff]  ;;  %v742_v40 = vld [vmem:[%s2039_s19 + $0x158] sm:$0xff] }
  0xbe   : > { %v1240_v49 = vmul.f32 %v892_v47, %v715_v42  ;;  %v1241_v50 = vmul.f32 %v892_v47, %v716_v43  ;;  %1201 = vperm.xlu0 %1618, %v1913_v41   ;;  %v739_v41 = vld [vmem:[%s2039_s19 + $0x140] sm:$0xff]  ;;  %v740_v42 = vld [vmem:[%s2039_s19 + $0x148] sm:$0xff] }
  0xbf   : > { %1393 = vst [vmem:[%s2048_s22 + $0x90] sm:$0xff] %v1242_v45  ;;  %1394 = vst.msk [vmem:[%s2048_s22 + $0x98] sm:$0xff] %vm1375_vm0, %v1243_v46 }
  0xc0   : > { %1391 = vst [vmem:[%s2048_s22 + $0x80] sm:$0xff] %v1240_v49  ;;  %1392 = vst.msk [vmem:[%s2048_s22 + $0x88] sm:$0xff] %vm1375_vm0, %v1241_v50  ;;  %v907_v56 = vpop.permute.xlu1 %906  ;;  %v745_v49 = vld [vmem:[%s2039_s19 + $0x170] sm:$0xff]  ;;  %v746_v50 = vld [vmem:[%s2039_s19 + $0x178] sm:$0xff] }
  0xc1   : > { %v1246_v57 = vmul.f32 %v907_v56, %v721_v51  ;;  %v1247_v58 = vmul.f32 %v907_v56, %v722_v52  ;;  %v902_v59 = vpop.permute.xlu0 %901  ;;  %1216 = vperm.xlu1 %1619, %v1915_v48   ;;  %v743_v51 = vld [vmem:[%s2039_s19 + $0x160] sm:$0xff]  ;;  %v744_v52 = vld [vmem:[%s2039_s19 + $0x168] sm:$0xff] }
  0xc2   : > { %v1244_v60 = vmul.f32 %v902_v59, %v719_v54  ;;  %v1245_v61 = vmul.f32 %v902_v59, %v720_v55  ;;  %1211 = vperm.xlu0 %1618, %v1917_v53   ;;  %v749_v59 = vld [vmem:[%s2039_s19 + $0x190] sm:$0xff] }
  0xc3   : > { %1397 = vst [vmem:[%s2048_s22 + $0xb0] sm:$0xff] %v1246_v57  ;;  %1398 = vst.msk [vmem:[%s2048_s22 + $0xb8] sm:$0xff] %vm1375_vm0, %v1247_v58 }
  0xc4   : > { %1395 = vst [vmem:[%s2048_s22 + $0xa0] sm:$0xff] %v1244_v60  ;;  %1396 = vst.msk [vmem:[%s2048_s22 + $0xa8] sm:$0xff] %vm1375_vm0, %v1245_v61  ;;  %v917_v3 = vpop.permute.xlu1 %916  ;;  %v750_v60 = vld [vmem:[%s2039_s19 + $0x198] sm:$0xff]  ;;  %v747_v61 = vld [vmem:[%s2039_s19 + $0x180] sm:$0xff] }
  0xc5   : > { %v1250_v4 = vmul.f32 %v917_v3, %v725_v62  ;;  %v1251_v5 = vmul.f32 %v917_v3, %v726_v63  ;;  %v912_v6 = vpop.permute.xlu0 %911  ;;  %v748_v62 = vld [vmem:[%s2039_s19 + $0x188] sm:$0xff] }
  0xc6   : > { %v1248_v7 = vmul.f32 %v912_v6, %v723_v1  ;;  %v1249_v8 = vmul.f32 %v912_v6, %v724_v2  ;;  %1221 = vperm.xlu0 %1618, %v1919_v0   ;;  %v754_v6 = vld [vmem:[%s2039_s19 + $0x1b8] sm:$0xff] }
  0xc7   : > { %1401 = vst [vmem:[%s2048_s22 + $0xd0] sm:$0xff] %v1250_v4  ;;  %1402 = vst.msk [vmem:[%s2048_s22 + $0xd8] sm:$0xff] %vm1375_vm0, %v1251_v5  ;;  %v753_v5 = vld [vmem:[%s2039_s19 + $0x1b0] sm:$0xff] }
  0xc8   : > { %1399 = vst [vmem:[%s2048_s22 + $0xc0] sm:$0xff] %v1248_v7  ;;  %1400 = vst.msk [vmem:[%s2048_s22 + $0xc8] sm:$0xff] %vm1375_vm0, %v1249_v8  ;;  %v927_v13 = vpop.permute.xlu1 %926  ;;  %v751_v7 = vld [vmem:[%s2039_s19 + $0x1a0] sm:$0xff]  ;;  %v752_v8 = vld [vmem:[%s2039_s19 + $0x1a8] sm:$0xff] }
  0xc9   : > { %v1254_v14 = vmul.f32 %v927_v13, %v729_v9  ;;  %v1255_v15 = vmul.f32 %v927_v13, %v730_v10  ;;  %v922_v16 = vpop.permute.xlu0 %921 }
  0xca   : > { %v1252_v17 = vmul.f32 %v922_v16, %v727_v11  ;;  %v1253_v18 = vmul.f32 %v922_v16, %v728_v12  ;;  %v758_v16 = vld [vmem:[%s2039_s19 + $0x1d8] sm:$0xff] }
  0xcb   : > { %1405 = vst [vmem:[%s2048_s22 + $0xf0] sm:$0xff] %v1254_v14  ;;  %1406 = vst.msk [vmem:[%s2048_s22 + $0xf8] sm:$0xff] %vm1375_vm0, %v1255_v15  ;;  %v757_v15 = vld [vmem:[%s2039_s19 + $0x1d0] sm:$0xff] }
  0xcc   : > { %1403 = vst [vmem:[%s2048_s22 + $0xe0] sm:$0xff] %v1252_v17  ;;  %1404 = vst.msk [vmem:[%s2048_s22 + $0xe8] sm:$0xff] %vm1375_vm0, %v1253_v18  ;;  %v937_v23 = vpop.permute.xlu1 %936  ;;  %v755_v17 = vld [vmem:[%s2039_s19 + $0x1c0] sm:$0xff]  ;;  %v756_v18 = vld [vmem:[%s2039_s19 + $0x1c8] sm:$0xff] }
  0xcd   : > { %v1258_v24 = vmul.f32 %v937_v23, %v733_v19  ;;  %v1259_v25 = vmul.f32 %v937_v23, %v734_v20  ;;  %v932_v26 = vpop.permute.xlu0 %931 }
  0xce   : > { %v1256_v27 = vmul.f32 %v932_v26, %v731_v21  ;;  %v1257_v28 = vmul.f32 %v932_v26, %v732_v22  ;;  %v762_v26 = vld [vmem:[%s2039_s19 + $0x1f8] sm:$0xff] }
  0xcf   : > { %1409 = vst [vmem:[%s2048_s22 + $0x110] sm:$0xff] %v1258_v24  ;;  %1410 = vst.msk [vmem:[%s2048_s22 + $0x118] sm:$0xff] %vm1375_vm0, %v1259_v25  ;;  %v761_v25 = vld [vmem:[%s2039_s19 + $0x1f0] sm:$0xff] }
  0xd0   : > { %1407 = vst [vmem:[%s2048_s22 + $0x100] sm:$0xff] %v1256_v27  ;;  %1408 = vst.msk [vmem:[%s2048_s22 + $0x108] sm:$0xff] %vm1375_vm0, %v1257_v28  ;;  %v947_v33 = vpop.permute.xlu1 %946  ;;  %v759_v27 = vld [vmem:[%s2039_s19 + $0x1e0] sm:$0xff]  ;;  %v760_v28 = vld [vmem:[%s2039_s19 + $0x1e8] sm:$0xff] }
  0xd1   : > { %v1262_v34 = vmul.f32 %v947_v33, %v737_v29  ;;  %v1263_v35 = vmul.f32 %v947_v33, %v738_v30  ;;  %v942_v36 = vpop.permute.xlu0 %941 }
  0xd2   : > { %v1260_v37 = vmul.f32 %v942_v36, %v735_v31  ;;  %v1261_v38 = vmul.f32 %v942_v36, %v736_v32  ;;  %v766_v36 = vld [vmem:[%s2039_s19 + $0x218] sm:$0xff] }
  0xd3   : > { %1413 = vst [vmem:[%s2048_s22 + $0x130] sm:$0xff] %v1262_v34  ;;  %1414 = vst.msk [vmem:[%s2048_s22 + $0x138] sm:$0xff] %vm1375_vm0, %v1263_v35  ;;  %v765_v35 = vld [vmem:[%s2039_s19 + $0x210] sm:$0xff] }
  0xd4   : > { %1411 = vst [vmem:[%s2048_s22 + $0x120] sm:$0xff] %v1260_v37  ;;  %1412 = vst.msk [vmem:[%s2048_s22 + $0x128] sm:$0xff] %vm1375_vm0, %v1261_v38  ;;  %v957_v43 = vpop.permute.xlu1 %956  ;;  %v763_v37 = vld [vmem:[%s2039_s19 + $0x200] sm:$0xff]  ;;  %v764_v38 = vld [vmem:[%s2039_s19 + $0x208] sm:$0xff] }
  0xd5   : > { %v1266_v44 = vmul.f32 %v957_v43, %v741_v39  ;;  %v1267_v45 = vmul.f32 %v957_v43, %v742_v40  ;;  %v952_v46 = vpop.permute.xlu0 %951 }
  0xd6   : > { %v1264_v47 = vmul.f32 %v952_v46, %v739_v41  ;;  %v1265_v48 = vmul.f32 %v952_v46, %v740_v42  ;;  %v770_v46 = vld [vmem:[%s2039_s19 + $0x238] sm:$0xff] }
  0xd7   : > { %1417 = vst [vmem:[%s2048_s22 + $0x150] sm:$0xff] %v1266_v44  ;;  %1418 = vst.msk [vmem:[%s2048_s22 + $0x158] sm:$0xff] %vm1375_vm0, %v1267_v45  ;;  %v769_v45 = vld [vmem:[%s2039_s19 + $0x230] sm:$0xff] }
  0xd8   : > { %1415 = vst [vmem:[%s2048_s22 + $0x140] sm:$0xff] %v1264_v47  ;;  %1416 = vst.msk [vmem:[%s2048_s22 + $0x148] sm:$0xff] %vm1375_vm0, %v1265_v48  ;;  %v967_v53 = vpop.permute.xlu1 %966  ;;  %v767_v47 = vld [vmem:[%s2039_s19 + $0x220] sm:$0xff]  ;;  %v768_v48 = vld [vmem:[%s2039_s19 + $0x228] sm:$0xff] }
  0xd9   : > { %v1270_v54 = vmul.f32 %v967_v53, %v745_v49  ;;  %v1271_v55 = vmul.f32 %v967_v53, %v746_v50  ;;  %v962_v56 = vpop.permute.xlu0 %961 }
  0xda   : > { %v1268_v57 = vmul.f32 %v962_v56, %v743_v51  ;;  %v1269_v58 = vmul.f32 %v962_v56, %v744_v52  ;;  %v774_v56 = vld [vmem:[%s2039_s19 + $0x258] sm:$0xff] }
  0xdb   : > { %1421 = vst [vmem:[%s2048_s22 + $0x170] sm:$0xff] %v1270_v54  ;;  %1422 = vst.msk [vmem:[%s2048_s22 + $0x178] sm:$0xff] %vm1375_vm0, %v1271_v55  ;;  %v773_v55 = vld [vmem:[%s2039_s19 + $0x250] sm:$0xff] }
  0xdc   : > { %1419 = vst [vmem:[%s2048_s22 + $0x160] sm:$0xff] %v1268_v57  ;;  %1420 = vst.msk [vmem:[%s2048_s22 + $0x168] sm:$0xff] %vm1375_vm0, %v1269_v58  ;;  %v977_v63 = vpop.permute.xlu1 %976  ;;  %v771_v57 = vld [vmem:[%s2039_s19 + $0x240] sm:$0xff]  ;;  %v772_v58 = vld [vmem:[%s2039_s19 + $0x248] sm:$0xff] }
  0xdd   : > { %v1274_v0 = vmul.f32 %v977_v63, %v749_v59  ;;  %v1275_v1 = vmul.f32 %v977_v63, %v750_v60  ;;  %v972_v2 = vpop.permute.xlu0 %971 }
  0xde   : > { %v1272_v3 = vmul.f32 %v972_v2, %v747_v61  ;;  %v1273_v4 = vmul.f32 %v972_v2, %v748_v62  ;;  %v778_v2 = vld [vmem:[%s2039_s19 + $0x278] sm:$0xff] }
  0xdf   : > { %1425 = vst [vmem:[%s2048_s22 + $0x190] sm:$0xff] %v1274_v0  ;;  %1426 = vst.msk [vmem:[%s2048_s22 + $0x198] sm:$0xff] %vm1375_vm0, %v1275_v1  ;;  %v777_v1 = vld [vmem:[%s2039_s19 + $0x270] sm:$0xff] }
  0xe0   : > { %1423 = vst [vmem:[%s2048_s22 + $0x180] sm:$0xff] %v1272_v3  ;;  %1424 = vst.msk [vmem:[%s2048_s22 + $0x188] sm:$0xff] %vm1375_vm0, %v1273_v4  ;;  %v987_v9 = vpop.permute.xlu1 %986  ;;  %v775_v3 = vld [vmem:[%s2039_s19 + $0x260] sm:$0xff]  ;;  %v776_v4 = vld [vmem:[%s2039_s19 + $0x268] sm:$0xff] }
  0xe1   : > { %v1278_v10 = vmul.f32 %v987_v9, %v753_v5  ;;  %v1279_v11 = vmul.f32 %v987_v9, %v754_v6  ;;  %v982_v12 = vpop.permute.xlu0 %981 }
  0xe2   : > { %v1276_v13 = vmul.f32 %v982_v12, %v751_v7  ;;  %v1277_v14 = vmul.f32 %v982_v12, %v752_v8  ;;  %v782_v12 = vld [vmem:[%s2039_s19 + $0x298] sm:$0xff] }
  0xe3   : > { %1429 = vst [vmem:[%s2048_s22 + $0x1b0] sm:$0xff] %v1278_v10  ;;  %1430 = vst.msk [vmem:[%s2048_s22 + $0x1b8] sm:$0xff] %vm1375_vm0, %v1279_v11  ;;  %v781_v11 = vld [vmem:[%s2039_s19 + $0x290] sm:$0xff] }
  0xe4   : > { %1427 = vst [vmem:[%s2048_s22 + $0x1a0] sm:$0xff] %v1276_v13  ;;  %1428 = vst.msk [vmem:[%s2048_s22 + $0x1a8] sm:$0xff] %vm1375_vm0, %v1277_v14  ;;  %v997_v19 = vpop.permute.xlu1 %996  ;;  %v779_v13 = vld [vmem:[%s2039_s19 + $0x280] sm:$0xff]  ;;  %v780_v14 = vld [vmem:[%s2039_s19 + $0x288] sm:$0xff] }
  0xe5   : > { %v1282_v20 = vmul.f32 %v997_v19, %v757_v15  ;;  %v1283_v21 = vmul.f32 %v997_v19, %v758_v16  ;;  %v992_v22 = vpop.permute.xlu0 %991 }
  0xe6   : > { %v1280_v23 = vmul.f32 %v992_v22, %v755_v17  ;;  %v1281_v24 = vmul.f32 %v992_v22, %v756_v18  ;;  %v786_v22 = vld [vmem:[%s2039_s19 + $0x2b8] sm:$0xff] }
  0xe7   : > { %1433 = vst [vmem:[%s2048_s22 + $0x1d0] sm:$0xff] %v1282_v20  ;;  %1434 = vst.msk [vmem:[%s2048_s22 + $0x1d8] sm:$0xff] %vm1375_vm0, %v1283_v21  ;;  %v785_v21 = vld [vmem:[%s2039_s19 + $0x2b0] sm:$0xff] }
  0xe8   : > { %1431 = vst [vmem:[%s2048_s22 + $0x1c0] sm:$0xff] %v1280_v23  ;;  %1432 = vst.msk [vmem:[%s2048_s22 + $0x1c8] sm:$0xff] %vm1375_vm0, %v1281_v24  ;;  %v1007_v29 = vpop.permute.xlu1 %1006  ;;  %v783_v23 = vld [vmem:[%s2039_s19 + $0x2a0] sm:$0xff]  ;;  %v784_v24 = vld [vmem:[%s2039_s19 + $0x2a8] sm:$0xff] }
  0xe9   : > { %v1286_v30 = vmul.f32 %v1007_v29, %v761_v25  ;;  %v1287_v31 = vmul.f32 %v1007_v29, %v762_v26  ;;  %v1002_v32 = vpop.permute.xlu0 %1001 }
  0xea   : > { %v1284_v33 = vmul.f32 %v1002_v32, %v759_v27  ;;  %v1285_v34 = vmul.f32 %v1002_v32, %v760_v28  ;;  %v790_v32 = vld [vmem:[%s2039_s19 + $0x2d8] sm:$0xff] }
  0xeb   : > { %1437 = vst [vmem:[%s2048_s22 + $0x1f0] sm:$0xff] %v1286_v30  ;;  %1438 = vst.msk [vmem:[%s2048_s22 + $0x1f8] sm:$0xff] %vm1375_vm0, %v1287_v31  ;;  %v789_v31 = vld [vmem:[%s2039_s19 + $0x2d0] sm:$0xff] }
  0xec   : > { %1435 = vst [vmem:[%s2048_s22 + $0x1e0] sm:$0xff] %v1284_v33  ;;  %1436 = vst.msk [vmem:[%s2048_s22 + $0x1e8] sm:$0xff] %vm1375_vm0, %v1285_v34  ;;  %v1017_v39 = vpop.permute.xlu1 %1016  ;;  %v787_v33 = vld [vmem:[%s2039_s19 + $0x2c0] sm:$0xff]  ;;  %v788_v34 = vld [vmem:[%s2039_s19 + $0x2c8] sm:$0xff] }
  0xed   : > { %v1290_v40 = vmul.f32 %v1017_v39, %v765_v35  ;;  %v1291_v41 = vmul.f32 %v1017_v39, %v766_v36  ;;  %v1012_v42 = vpop.permute.xlu0 %1011 }
  0xee   : > { %v1288_v43 = vmul.f32 %v1012_v42, %v763_v37  ;;  %v1289_v44 = vmul.f32 %v1012_v42, %v764_v38  ;;  %v794_v42 = vld [vmem:[%s2039_s19 + $0x2f8] sm:$0xff] }
  0xef   : > { %1441 = vst [vmem:[%s2048_s22 + $0x210] sm:$0xff] %v1290_v40  ;;  %1442 = vst.msk [vmem:[%s2048_s22 + $0x218] sm:$0xff] %vm1375_vm0, %v1291_v41  ;;  %v793_v41 = vld [vmem:[%s2039_s19 + $0x2f0] sm:$0xff] }
  0xf0   : > { %1439 = vst [vmem:[%s2048_s22 + $0x200] sm:$0xff] %v1288_v43  ;;  %1440 = vst.msk [vmem:[%s2048_s22 + $0x208] sm:$0xff] %vm1375_vm0, %v1289_v44  ;;  %v1027_v49 = vpop.permute.xlu1 %1026  ;;  %v791_v43 = vld [vmem:[%s2039_s19 + $0x2e0] sm:$0xff]  ;;  %v792_v44 = vld [vmem:[%s2039_s19 + $0x2e8] sm:$0xff] }
  0xf1   : > { %v1294_v50 = vmul.f32 %v1027_v49, %v769_v45  ;;  %v1295_v51 = vmul.f32 %v1027_v49, %v770_v46  ;;  %v1022_v52 = vpop.permute.xlu0 %1021 }
  0xf2   : > { %v1292_v53 = vmul.f32 %v1022_v52, %v767_v47  ;;  %v1293_v54 = vmul.f32 %v1022_v52, %v768_v48  ;;  %v798_v52 = vld [vmem:[%s2039_s19 + $0x318] sm:$0xff] }
  0xf3   : > { %1445 = vst [vmem:[%s2048_s22 + $0x230] sm:$0xff] %v1294_v50  ;;  %1446 = vst.msk [vmem:[%s2048_s22 + $0x238] sm:$0xff] %vm1375_vm0, %v1295_v51  ;;  %v797_v51 = vld [vmem:[%s2039_s19 + $0x310] sm:$0xff] }
  0xf4   : > { %1443 = vst [vmem:[%s2048_s22 + $0x220] sm:$0xff] %v1292_v53  ;;  %1444 = vst.msk [vmem:[%s2048_s22 + $0x228] sm:$0xff] %vm1375_vm0, %v1293_v54  ;;  %v1037_v59 = vpop.permute.xlu1 %1036  ;;  %v795_v53 = vld [vmem:[%s2039_s19 + $0x300] sm:$0xff]  ;;  %v796_v54 = vld [vmem:[%s2039_s19 + $0x308] sm:$0xff] }
  0xf5   : > { %v1298_v60 = vmul.f32 %v1037_v59, %v773_v55  ;;  %v1299_v61 = vmul.f32 %v1037_v59, %v774_v56  ;;  %v1032_v62 = vpop.permute.xlu0 %1031 }
  0xf6   : > { %v1296_v63 = vmul.f32 %v1032_v62, %v771_v57  ;;  %v1297_v0 = vmul.f32 %v1032_v62, %v772_v58  ;;  %v802_v62 = vld [vmem:[%s2039_s19 + $0x338] sm:$0xff] }
  0xf7   : > { %1449 = vst [vmem:[%s2048_s22 + $0x250] sm:$0xff] %v1298_v60  ;;  %1450 = vst.msk [vmem:[%s2048_s22 + $0x258] sm:$0xff] %vm1375_vm0, %v1299_v61  ;;  %v801_v61 = vld [vmem:[%s2039_s19 + $0x330] sm:$0xff] }
  0xf8   : > { %1447 = vst [vmem:[%s2048_s22 + $0x240] sm:$0xff] %v1296_v63  ;;  %1448 = vst.msk [vmem:[%s2048_s22 + $0x248] sm:$0xff] %vm1375_vm0, %v1297_v0  ;;  %v1047_v5 = vpop.permute.xlu1 %1046  ;;  %v799_v63 = vld [vmem:[%s2039_s19 + $0x320] sm:$0xff]  ;;  %v800_v0 = vld [vmem:[%s2039_s19 + $0x328] sm:$0xff] }
  0xf9   : > { %v1302_v6 = vmul.f32 %v1047_v5, %v777_v1  ;;  %v1303_v7 = vmul.f32 %v1047_v5, %v778_v2  ;;  %v1042_v8 = vpop.permute.xlu0 %1041 }
  0xfa   : > { %v1300_v9 = vmul.f32 %v1042_v8, %v775_v3  ;;  %v1301_v10 = vmul.f32 %v1042_v8, %v776_v4  ;;  %v806_v8 = vld [vmem:[%s2039_s19 + $0x358] sm:$0xff] }
  0xfb   : > { %1453 = vst [vmem:[%s2048_s22 + $0x270] sm:$0xff] %v1302_v6  ;;  %1454 = vst.msk [vmem:[%s2048_s22 + $0x278] sm:$0xff] %vm1375_vm0, %v1303_v7  ;;  %v805_v7 = vld [vmem:[%s2039_s19 + $0x350] sm:$0xff] }
  0xfc   : > { %1451 = vst [vmem:[%s2048_s22 + $0x260] sm:$0xff] %v1300_v9  ;;  %1452 = vst.msk [vmem:[%s2048_s22 + $0x268] sm:$0xff] %vm1375_vm0, %v1301_v10  ;;  %v1057_v15 = vpop.permute.xlu1 %1056  ;;  %v803_v9 = vld [vmem:[%s2039_s19 + $0x340] sm:$0xff]  ;;  %v804_v10 = vld [vmem:[%s2039_s19 + $0x348] sm:$0xff] }
  0xfd   : > { %v1306_v16 = vmul.f32 %v1057_v15, %v781_v11  ;;  %v1307_v17 = vmul.f32 %v1057_v15, %v782_v12  ;;  %v1052_v18 = vpop.permute.xlu0 %1051 }
  0xfe   : > { %v1304_v19 = vmul.f32 %v1052_v18, %v779_v13  ;;  %v1305_v20 = vmul.f32 %v1052_v18, %v780_v14  ;;  %v810_v18 = vld [vmem:[%s2039_s19 + $0x378] sm:$0xff] }
  0xff   : > { %1457 = vst [vmem:[%s2048_s22 + $0x290] sm:$0xff] %v1306_v16  ;;  %1458 = vst.msk [vmem:[%s2048_s22 + $0x298] sm:$0xff] %vm1375_vm0, %v1307_v17  ;;  %v809_v17 = vld [vmem:[%s2039_s19 + $0x370] sm:$0xff] }
 0x100   : > { %1455 = vst [vmem:[%s2048_s22 + $0x280] sm:$0xff] %v1304_v19  ;;  %1456 = vst.msk [vmem:[%s2048_s22 + $0x288] sm:$0xff] %vm1375_vm0, %v1305_v20  ;;  %v1067_v25 = vpop.permute.xlu1 %1066  ;;  %v807_v19 = vld [vmem:[%s2039_s19 + $0x360] sm:$0xff]  ;;  %v808_v20 = vld [vmem:[%s2039_s19 + $0x368] sm:$0xff] }
 0x101   : > { %v1310_v26 = vmul.f32 %v1067_v25, %v785_v21  ;;  %v1311_v27 = vmul.f32 %v1067_v25, %v786_v22  ;;  %v1062_v28 = vpop.permute.xlu0 %1061 }
 0x102   : > { %v1308_v29 = vmul.f32 %v1062_v28, %v783_v23  ;;  %v1309_v30 = vmul.f32 %v1062_v28, %v784_v24  ;;  %v814_v28 = vld [vmem:[%s2039_s19 + $0x398] sm:$0xff] }
 0x103   : > { %1461 = vst [vmem:[%s2048_s22 + $0x2b0] sm:$0xff] %v1310_v26  ;;  %1462 = vst.msk [vmem:[%s2048_s22 + $0x2b8] sm:$0xff] %vm1375_vm0, %v1311_v27  ;;  %v813_v27 = vld [vmem:[%s2039_s19 + $0x390] sm:$0xff] }
 0x104   : > { %1459 = vst [vmem:[%s2048_s22 + $0x2a0] sm:$0xff] %v1308_v29  ;;  %1460 = vst.msk [vmem:[%s2048_s22 + $0x2a8] sm:$0xff] %vm1375_vm0, %v1309_v30  ;;  %v1077_v35 = vpop.permute.xlu1 %1076  ;;  %v811_v29 = vld [vmem:[%s2039_s19 + $0x380] sm:$0xff]  ;;  %v812_v30 = vld [vmem:[%s2039_s19 + $0x388] sm:$0xff] }
 0x105   : > { %v1314_v36 = vmul.f32 %v1077_v35, %v789_v31  ;;  %v1315_v37 = vmul.f32 %v1077_v35, %v790_v32  ;;  %v1072_v38 = vpop.permute.xlu0 %1071 }
 0x106   : > { %v1312_v39 = vmul.f32 %v1072_v38, %v787_v33  ;;  %v1313_v40 = vmul.f32 %v1072_v38, %v788_v34  ;;  %v818_v38 = vld [vmem:[%s2039_s19 + $0x3b8] sm:$0xff] }
 0x107   : > { %1465 = vst [vmem:[%s2048_s22 + $0x2d0] sm:$0xff] %v1314_v36  ;;  %1466 = vst.msk [vmem:[%s2048_s22 + $0x2d8] sm:$0xff] %vm1375_vm0, %v1315_v37  ;;  %v817_v37 = vld [vmem:[%s2039_s19 + $0x3b0] sm:$0xff] }
 0x108   : > { %1463 = vst [vmem:[%s2048_s22 + $0x2c0] sm:$0xff] %v1312_v39  ;;  %1464 = vst.msk [vmem:[%s2048_s22 + $0x2c8] sm:$0xff] %vm1375_vm0, %v1313_v40  ;;  %v1087_v45 = vpop.permute.xlu1 %1086  ;;  %v815_v39 = vld [vmem:[%s2039_s19 + $0x3a0] sm:$0xff]  ;;  %v816_v40 = vld [vmem:[%s2039_s19 + $0x3a8] sm:$0xff] }
 0x109   : > { %v1318_v46 = vmul.f32 %v1087_v45, %v793_v41  ;;  %v1319_v47 = vmul.f32 %v1087_v45, %v794_v42  ;;  %v1082_v48 = vpop.permute.xlu0 %1081 }
 0x10a   : > { %v1316_v49 = vmul.f32 %v1082_v48, %v791_v43  ;;  %v1317_v50 = vmul.f32 %v1082_v48, %v792_v44  ;;  %v822_v48 = vld [vmem:[%s2039_s19 + $0x3d8] sm:$0xff] }
 0x10b   : > { %1469 = vst [vmem:[%s2048_s22 + $0x2f0] sm:$0xff] %v1318_v46  ;;  %1470 = vst.msk [vmem:[%s2048_s22 + $0x2f8] sm:$0xff] %vm1375_vm0, %v1319_v47  ;;  %v821_v47 = vld [vmem:[%s2039_s19 + $0x3d0] sm:$0xff] }
 0x10c   : > { %1467 = vst [vmem:[%s2048_s22 + $0x2e0] sm:$0xff] %v1316_v49  ;;  %1468 = vst.msk [vmem:[%s2048_s22 + $0x2e8] sm:$0xff] %vm1375_vm0, %v1317_v50  ;;  %v1097_v55 = vpop.permute.xlu1 %1096  ;;  %v819_v49 = vld [vmem:[%s2039_s19 + $0x3c0] sm:$0xff]  ;;  %v820_v50 = vld [vmem:[%s2039_s19 + $0x3c8] sm:$0xff] }
 0x10d   : > { %v1322_v56 = vmul.f32 %v1097_v55, %v797_v51  ;;  %v1323_v57 = vmul.f32 %v1097_v55, %v798_v52  ;;  %v1092_v58 = vpop.permute.xlu0 %1091 }
 0x10e   : > { %v1320_v59 = vmul.f32 %v1092_v58, %v795_v53  ;;  %v1321_v60 = vmul.f32 %v1092_v58, %v796_v54  ;;  %v826_v58 = vld [vmem:[%s2039_s19 + $0x3f8] sm:$0xff] }
 0x10f   : > { %1473 = vst [vmem:[%s2048_s22 + $0x310] sm:$0xff] %v1322_v56  ;;  %1474 = vst.msk [vmem:[%s2048_s22 + $0x318] sm:$0xff] %vm1375_vm0, %v1323_v57  ;;  %v825_v57 = vld [vmem:[%s2039_s19 + $0x3f0] sm:$0xff] }
 0x110   : > { %1471 = vst [vmem:[%s2048_s22 + $0x300] sm:$0xff] %v1320_v59  ;;  %1472 = vst.msk [vmem:[%s2048_s22 + $0x308] sm:$0xff] %vm1375_vm0, %v1321_v60  ;;  %v1107_v1 = vpop.permute.xlu1 %1106  ;;  %v823_v59 = vld [vmem:[%s2039_s19 + $0x3e0] sm:$0xff]  ;;  %v824_v60 = vld [vmem:[%s2039_s19 + $0x3e8] sm:$0xff] }
 0x111   : > { %v1326_v2 = vmul.f32 %v1107_v1, %v801_v61  ;;  %v1327_v3 = vmul.f32 %v1107_v1, %v802_v62  ;;  %v1102_v4 = vpop.permute.xlu0 %1101 }
 0x112   : > { %v1324_v5 = vmul.f32 %v1102_v4, %v799_v63  ;;  %v1325_v6 = vmul.f32 %v1102_v4, %v800_v0  ;;  %v830_v4 = vld [vmem:[%s2039_s19 + $0x418] sm:$0xff] }
 0x113   : > { %1477 = vst [vmem:[%s2048_s22 + $0x330] sm:$0xff] %v1326_v2  ;;  %1478 = vst.msk [vmem:[%s2048_s22 + $0x338] sm:$0xff] %vm1375_vm0, %v1327_v3  ;;  %v829_v3 = vld [vmem:[%s2039_s19 + $0x410] sm:$0xff] }
 0x114   : > { %1475 = vst [vmem:[%s2048_s22 + $0x320] sm:$0xff] %v1324_v5  ;;  %1476 = vst.msk [vmem:[%s2048_s22 + $0x328] sm:$0xff] %vm1375_vm0, %v1325_v6  ;;  %v1117_v11 = vpop.permute.xlu1 %1116  ;;  %v827_v5 = vld [vmem:[%s2039_s19 + $0x400] sm:$0xff]  ;;  %v828_v6 = vld [vmem:[%s2039_s19 + $0x408] sm:$0xff] }
 0x115   : > { %v1330_v12 = vmul.f32 %v1117_v11, %v805_v7  ;;  %v1331_v13 = vmul.f32 %v1117_v11, %v806_v8  ;;  %v1112_v14 = vpop.permute.xlu0 %1111 }
 0x116   : > { %v1328_v15 = vmul.f32 %v1112_v14, %v803_v9  ;;  %v1329_v16 = vmul.f32 %v1112_v14, %v804_v10  ;;  %v834_v14 = vld [vmem:[%s2039_s19 + $0x438] sm:$0xff] }
 0x117   : > { %1481 = vst [vmem:[%s2048_s22 + $0x350] sm:$0xff] %v1330_v12  ;;  %1482 = vst.msk [vmem:[%s2048_s22 + $0x358] sm:$0xff] %vm1375_vm0, %v1331_v13  ;;  %v833_v13 = vld [vmem:[%s2039_s19 + $0x430] sm:$0xff] }
 0x118   : > { %1479 = vst [vmem:[%s2048_s22 + $0x340] sm:$0xff] %v1328_v15  ;;  %1480 = vst.msk [vmem:[%s2048_s22 + $0x348] sm:$0xff] %vm1375_vm0, %v1329_v16  ;;  %v1127_v21 = vpop.permute.xlu1 %1126  ;;  %v831_v15 = vld [vmem:[%s2039_s19 + $0x420] sm:$0xff]  ;;  %v832_v16 = vld [vmem:[%s2039_s19 + $0x428] sm:$0xff] }
 0x119   : > { %v1334_v22 = vmul.f32 %v1127_v21, %v809_v17  ;;  %v1335_v23 = vmul.f32 %v1127_v21, %v810_v18  ;;  %v1122_v24 = vpop.permute.xlu0 %1121 }
 0x11a   : > { %v1332_v25 = vmul.f32 %v1122_v24, %v807_v19  ;;  %v1333_v26 = vmul.f32 %v1122_v24, %v808_v20  ;;  %v838_v24 = vld [vmem:[%s2039_s19 + $0x458] sm:$0xff] }
 0x11b   : > { %1485 = vst [vmem:[%s2048_s22 + $0x370] sm:$0xff] %v1334_v22  ;;  %1486 = vst.msk [vmem:[%s2048_s22 + $0x378] sm:$0xff] %vm1375_vm0, %v1335_v23  ;;  %v837_v23 = vld [vmem:[%s2039_s19 + $0x450] sm:$0xff] }
 0x11c   : > { %1483 = vst [vmem:[%s2048_s22 + $0x360] sm:$0xff] %v1332_v25  ;;  %1484 = vst.msk [vmem:[%s2048_s22 + $0x368] sm:$0xff] %vm1375_vm0, %v1333_v26  ;;  %v1137_v31 = vpop.permute.xlu1 %1136  ;;  %v835_v25 = vld [vmem:[%s2039_s19 + $0x440] sm:$0xff]  ;;  %v836_v26 = vld [vmem:[%s2039_s19 + $0x448] sm:$0xff] }
 0x11d   : > { %v1338_v32 = vmul.f32 %v1137_v31, %v813_v27  ;;  %v1339_v33 = vmul.f32 %v1137_v31, %v814_v28  ;;  %v1132_v34 = vpop.permute.xlu0 %1131 }
 0x11e   : > { %v1336_v35 = vmul.f32 %v1132_v34, %v811_v29  ;;  %v1337_v36 = vmul.f32 %v1132_v34, %v812_v30  ;;  %v842_v34 = vld [vmem:[%s2039_s19 + $0x478] sm:$0xff] }
 0x11f   : > { %1489 = vst [vmem:[%s2048_s22 + $0x390] sm:$0xff] %v1338_v32  ;;  %1490 = vst.msk [vmem:[%s2048_s22 + $0x398] sm:$0xff] %vm1375_vm0, %v1339_v33  ;;  %v841_v33 = vld [vmem:[%s2039_s19 + $0x470] sm:$0xff] }
 0x120   : > { %1487 = vst [vmem:[%s2048_s22 + $0x380] sm:$0xff] %v1336_v35  ;;  %1488 = vst.msk [vmem:[%s2048_s22 + $0x388] sm:$0xff] %vm1375_vm0, %v1337_v36  ;;  %v1147_v41 = vpop.permute.xlu1 %1146  ;;  %v839_v35 = vld [vmem:[%s2039_s19 + $0x460] sm:$0xff]  ;;  %v840_v36 = vld [vmem:[%s2039_s19 + $0x468] sm:$0xff] }
 0x121   : > { %v1342_v42 = vmul.f32 %v1147_v41, %v817_v37  ;;  %v1343_v43 = vmul.f32 %v1147_v41, %v818_v38  ;;  %v1142_v44 = vpop.permute.xlu0 %1141 }
 0x122   : > { %v1340_v45 = vmul.f32 %v1142_v44, %v815_v39  ;;  %v1341_v46 = vmul.f32 %v1142_v44, %v816_v40  ;;  %v846_v44 = vld [vmem:[%s2039_s19 + $0x498] sm:$0xff] }
 0x123   : > { %1493 = vst [vmem:[%s2048_s22 + $0x3b0] sm:$0xff] %v1342_v42  ;;  %1494 = vst.msk [vmem:[%s2048_s22 + $0x3b8] sm:$0xff] %vm1375_vm0, %v1343_v43  ;;  %v845_v43 = vld [vmem:[%s2039_s19 + $0x490] sm:$0xff] }
 0x124   : > { %1491 = vst [vmem:[%s2048_s22 + $0x3a0] sm:$0xff] %v1340_v45  ;;  %1492 = vst.msk [vmem:[%s2048_s22 + $0x3a8] sm:$0xff] %vm1375_vm0, %v1341_v46  ;;  %v1157_v51 = vpop.permute.xlu1 %1156  ;;  %v843_v45 = vld [vmem:[%s2039_s19 + $0x480] sm:$0xff]  ;;  %v844_v46 = vld [vmem:[%s2039_s19 + $0x488] sm:$0xff] }
 0x125   : > { %v1346_v52 = vmul.f32 %v1157_v51, %v821_v47  ;;  %v1347_v53 = vmul.f32 %v1157_v51, %v822_v48  ;;  %v1152_v54 = vpop.permute.xlu0 %1151 }
 0x126   : > { %v1344_v55 = vmul.f32 %v1152_v54, %v819_v49  ;;  %v1345_v56 = vmul.f32 %v1152_v54, %v820_v50  ;;  %v848_v54 = vld [vmem:[%s2039_s19 + $0x4a8] sm:$0xff] }
 0x127   : > { %1497 = vst [vmem:[%s2048_s22 + $0x3d0] sm:$0xff] %v1346_v52  ;;  %1498 = vst.msk [vmem:[%s2048_s22 + $0x3d8] sm:$0xff] %vm1375_vm0, %v1347_v53  ;;  %v847_v53 = vld [vmem:[%s2039_s19 + $0x4a0] sm:$0xff] }
 0x128   : > { %1495 = vst [vmem:[%s2048_s22 + $0x3c0] sm:$0xff] %v1344_v55  ;;  %1496 = vst.msk [vmem:[%s2048_s22 + $0x3c8] sm:$0xff] %vm1375_vm0, %v1345_v56  ;;  %v1167_v61 = vpop.permute.xlu1 %1166 }
 0x129   : > { %v1350_v62 = vmul.f32 %v1167_v61, %v825_v57  ;;  %v1351_v63 = vmul.f32 %v1167_v61, %v826_v58  ;;  %v1162_v0 = vpop.permute.xlu0 %1161 }
 0x12a   : > { %v1348_v1 = vmul.f32 %v1162_v0, %v823_v59  ;;  %v1349_v2 = vmul.f32 %v1162_v0, %v824_v60 }
 0x12b   : > { %1501 = vst [vmem:[%s2048_s22 + $0x3f0] sm:$0xff] %v1350_v62  ;;  %1502 = vst.msk [vmem:[%s2048_s22 + $0x3f8] sm:$0xff] %vm1375_vm0, %v1351_v63 }
 0x12c   : > { %1499 = vst [vmem:[%s2048_s22 + $0x3e0] sm:$0xff] %v1348_v1  ;;  %1500 = vst.msk [vmem:[%s2048_s22 + $0x3e8] sm:$0xff] %vm1375_vm0, %v1349_v2  ;;  %v1177_v7 = vpop.permute.xlu1 %1176 }
 0x12d   : > { %v1354_v8 = vmul.f32 %v1177_v7, %v829_v3  ;;  %v1355_v9 = vmul.f32 %v1177_v7, %v830_v4  ;;  %v1172_v10 = vpop.permute.xlu0 %1171 }
 0x12e   : > { %v1352_v11 = vmul.f32 %v1172_v10, %v827_v5  ;;  %v1353_v12 = vmul.f32 %v1172_v10, %v828_v6 }
 0x12f   : > { %1505 = vst [vmem:[%s2048_s22 + $0x410] sm:$0xff] %v1354_v8  ;;  %1506 = vst.msk [vmem:[%s2048_s22 + $0x418] sm:$0xff] %vm1375_vm0, %v1355_v9 }
 0x130   : > { %1503 = vst [vmem:[%s2048_s22 + $0x400] sm:$0xff] %v1352_v11  ;;  %1504 = vst.msk [vmem:[%s2048_s22 + $0x408] sm:$0xff] %vm1375_vm0, %v1353_v12  ;;  %v1187_v17 = vpop.permute.xlu1 %1186 }
 0x131   : > { %v1358_v18 = vmul.f32 %v1187_v17, %v833_v13  ;;  %v1359_v19 = vmul.f32 %v1187_v17, %v834_v14  ;;  %v1182_v20 = vpop.permute.xlu0 %1181 }
 0x132   : > { %v1356_v21 = vmul.f32 %v1182_v20, %v831_v15  ;;  %v1357_v22 = vmul.f32 %v1182_v20, %v832_v16 }
 0x133   : > { %1509 = vst [vmem:[%s2048_s22 + $0x430] sm:$0xff] %v1358_v18  ;;  %1510 = vst.msk [vmem:[%s2048_s22 + $0x438] sm:$0xff] %vm1375_vm0, %v1359_v19 }
 0x134   : > { %1507 = vst [vmem:[%s2048_s22 + $0x420] sm:$0xff] %v1356_v21  ;;  %1508 = vst.msk [vmem:[%s2048_s22 + $0x428] sm:$0xff] %vm1375_vm0, %v1357_v22  ;;  %v1197_v27 = vpop.permute.xlu1 %1196 }
 0x135   : > { %v1362_v28 = vmul.f32 %v1197_v27, %v837_v23  ;;  %v1363_v29 = vmul.f32 %v1197_v27, %v838_v24  ;;  %v1192_v30 = vpop.permute.xlu0 %1191 }
 0x136   : > { %v1360_v31 = vmul.f32 %v1192_v30, %v835_v25  ;;  %v1361_v32 = vmul.f32 %v1192_v30, %v836_v26 }
 0x137   : > { %1513 = vst [vmem:[%s2048_s22 + $0x450] sm:$0xff] %v1362_v28  ;;  %1514 = vst.msk [vmem:[%s2048_s22 + $0x458] sm:$0xff] %vm1375_vm0, %v1363_v29 }
 0x138   : > { %1511 = vst [vmem:[%s2048_s22 + $0x440] sm:$0xff] %v1360_v31  ;;  %1512 = vst.msk [vmem:[%s2048_s22 + $0x448] sm:$0xff] %vm1375_vm0, %v1361_v32  ;;  %v1207_v37 = vpop.permute.xlu1 %1206 }
 0x139   : > { %v1366_v38 = vmul.f32 %v1207_v37, %v841_v33  ;;  %v1367_v39 = vmul.f32 %v1207_v37, %v842_v34  ;;  %v1202_v40 = vpop.permute.xlu0 %1201 }
 0x13a   : > { %v1364_v41 = vmul.f32 %v1202_v40, %v839_v35  ;;  %v1365_v42 = vmul.f32 %v1202_v40, %v840_v36 }
 0x13b   : > { %1517 = vst [vmem:[%s2048_s22 + $0x470] sm:$0xff] %v1366_v38  ;;  %1518 = vst.msk [vmem:[%s2048_s22 + $0x478] sm:$0xff] %vm1375_vm0, %v1367_v39 }
 0x13c   : > { %1515 = vst [vmem:[%s2048_s22 + $0x460] sm:$0xff] %v1364_v41  ;;  %1516 = vst.msk [vmem:[%s2048_s22 + $0x468] sm:$0xff] %vm1375_vm0, %v1365_v42  ;;  %v1217_v47 = vpop.permute.xlu1 %1216 }
 0x13d   : > { %v1370_v48 = vmul.f32 %v1217_v47, %v845_v43  ;;  %v1371_v49 = vmul.f32 %v1217_v47, %v846_v44  ;;  %v1212_v50 = vpop.permute.xlu0 %1211 }
 0x13e   : > { %v1368_v51 = vmul.f32 %v1212_v50, %v843_v45  ;;  %v1369_v52 = vmul.f32 %v1212_v50, %v844_v46 }
 0x13f   : > { %1521 = vst [vmem:[%s2048_s22 + $0x490] sm:$0xff] %v1370_v48  ;;  %1522 = vst.msk [vmem:[%s2048_s22 + $0x498] sm:$0xff] %vm1375_vm0, %v1371_v49 }
 0x140   : > { %1519 = vst [vmem:[%s2048_s22 + $0x480] sm:$0xff] %v1368_v51  ;;  %1520 = vst.msk [vmem:[%s2048_s22 + $0x488] sm:$0xff] %vm1375_vm0, %v1369_v52 }
 0x141   : > { %v1222_v55 = vpop.permute.xlu0 %1221 }
 0x142   : > { %v1372_v56 = vmul.f32 %v1222_v55, %v847_v53  ;;  %v1373_v57 = vmul.f32 %v1222_v55, %v848_v54 }
 0x144   : > { %1523 = vst [vmem:[%s2048_s22 + $0x4a0] sm:$0xff] %v1372_v56  ;;  %1524 = vst.msk [vmem:[%s2048_s22 + $0x4a8] sm:$0xff] %vm1375_vm0, %v1373_v57 }
 0x145 PF: > { %s12_s9 = sadd.s32 1, %s1926_s9  }
 0x146   : > { %p9_p4 = scmp.ge.s32.totalorder %s12_s9, 4  }
 0x148   :  { %11 = sbr.rel (!%p9_p4) target bundleno = 1 (0x1), region = 61 }

</bundles_post_ra>
